<compile_context>
chip_gen: v5e
topology: v5e:2x2
jax: 0.10.0
libtpu: 0.0.40
codegen_flags: <defaults>
</compile_context>

<pallas_src>
import jax
import jax.numpy as jnp
from jax.experimental import pallas as pl
from jax.experimental.pallas import tpu as pltpu


def _round_up(v: int, m: int) -> int:
    return (v + m - 1) // m * m


def _mlp_kernel(x_ref, w1_ref, b1_ref, w2_ref, b2_ref, o_ref):
    # x_ref:  [TB, 784]  bf16
    # w1_ref: [784, 768] bf16   b1_ref: [1, 768] f32
    # w2_ref: [768, 128] bf16   b2_ref: [1, 128] f32
    # o_ref:  [TB, 128]  f32
    x = x_ref[...]
    h = jnp.dot(x, w1_ref[...], preferred_element_type=jnp.float32)   # [TB, 768] f32
    h = jnp.maximum(h + b1_ref[...], 0.0)                              # bias + ReLU in f32
    y = jnp.dot(h.astype(jnp.bfloat16), w2_ref[...],
                preferred_element_type=jnp.float32)                    # [TB, 128] f32
    o_ref[...] = (y + b2_ref[...]).astype(o_ref.dtype)


def dummy_test_forward(x_nchw, w1, b1, w2, b2):
    """x_nchw: [B, 1, 28, 28] f32. w1: [784, 676], w2: [676, 10] (stored [in, out]).

    Returns [B, 10] f32."""
    B = x_nchw.shape[0]
    x_flat = x_nchw.reshape(B, -1)                 # torch .flatten(1), [B, 784]
    in_f = x_flat.shape[1]                          # 784
    hid = w1.shape[1]                               # 676
    out = w2.shape[1]                               # 10

    # Lane-dense padded dims.
    HID_P = _round_up(hid, 128)                     # 768
    OUT_P = _round_up(out, 128)                     # 128

    # Batch tiling: big batches get 256-row tiles (pipelined, megacore-parallel);
    # tiny batches use one padded block.
    TILE_B = 256 if B >= 256 else _round_up(B, 8)
    B_pad = _round_up(B, TILE_B)
    n_blocks = B_pad // TILE_B

    # Pad + cast operands (zero padding keeps the math identical).
    x_p = jnp.zeros((B_pad, in_f), jnp.bfloat16).at[:B].set(x_flat.astype(jnp.bfloat16))
    w1_p = jnp.zeros((in_f, HID_P), jnp.bfloat16).at[:, :hid].set(w1.astype(jnp.bfloat16))
    b1_p = jnp.zeros((1, HID_P), jnp.float32).at[:, :hid].set(b1.reshape(1, hid))
    w2_p = jnp.zeros((HID_P, OUT_P), jnp.bfloat16).at[:hid, :out].set(w2.astype(jnp.bfloat16))
    b2_p = jnp.zeros((1, OUT_P), jnp.float32).at[:, :out].set(b2.reshape(1, out))

    y_pad = pl.pallas_call(
        _mlp_kernel,
        out_shape=jax.ShapeDtypeStruct((B_pad, OUT_P), jnp.float32),
        grid=(n_blocks,),
        in_specs=[
            pl.BlockSpec((TILE_B, in_f), lambda i: (i, 0)),   # x tile, pipelined over B
            pl.BlockSpec((in_f, HID_P), lambda i: (0, 0)),    # W1: constant block -> VMEM-resident
            pl.BlockSpec((1, HID_P),   lambda i: (0, 0)),     # b1
            pl.BlockSpec((HID_P, OUT_P), lambda i: (0, 0)),   # W2
            pl.BlockSpec((1, OUT_P),   lambda i: (0, 0)),     # b2
        ],
        out_specs=pl.BlockSpec((TILE_B, OUT_P), lambda i: (i, 0)),
        compiler_params=pltpu.CompilerParams(
            dimension_semantics=("parallel",),                # 2x on v7x megacore, no-op elsewhere
        ),
    )(x_p, w1_p, b1_p, w2_p, b2_p)

    return y_pad[:B, :out]


def init_params(key, im_size=28):
    in_f = im_size * im_size          # 784
    hid_f = 26 * 26                   # 676
    out_f = 10
    k1, k2, k3, k4 = jax.random.split(key, 4)
    # Deterministic synthetic init (stored as [in, out], i.e. W^T of torch layout).
    w1 = jax.random.normal(k1, (in_f, hid_f), jnp.float32) * (1.0 / jnp.sqrt(in_f))
    b1 = jax.random.normal(k2, (hid_f,), jnp.float32) * 0.01
    w2 = jax.random.normal(k3, (hid_f, out_f), jnp.float32) * (1.0 / jnp.sqrt(hid_f))
    b2 = jax.random.normal(k4, (out_f,), jnp.float32) * 0.01
    return w1, b1, w2, b2


if __name__ == "__main__":
    key = jax.random.PRNGKey(0)
    kx, kp = jax.random.split(key)

    B, C, H, W = 2, 1, 28, 28
    x = jax.random.normal(kx, (B, C, H, W), jnp.float32)
    w1, b1, w2, b2 = init_params(kp, im_size=H)

    y = dummy_test_forward(x, w1, b1, w2, b2)
    y = jax.block_until_ready(y)

    # Cross-check against a pure-JAX f32 reference of the same math.
    # bf16 operands with f32 accumulation -> relaxed tolerance.
    ref = jnp.maximum(x.reshape(B, -1) @ w1 + b1, 0.0) @ w2 + b2
    assert y.shape == (B, 10)
    assert jnp.allclose(y, ref, atol=2e-2, rtol=2e-2)

    print("KERNEL_OK")
</pallas_src>

<mosaic_0001>
module attributes {stable_mosaic.version = 11 : i64} {
  func.func @_mlp_kernel(%arg0: i32, %arg1: memref<8x784xbf16, #tpu.memory_space<vmem>>, %arg2: memref<784x768xbf16, #tpu.memory_space<vmem>>, %arg3: memref<1x768xf32, #tpu.memory_space<vmem>>, %arg4: memref<768x128xbf16, #tpu.memory_space<vmem>>, %arg5: memref<1x128xf32, #tpu.memory_space<vmem>>, %arg6: memref<8x128xf32, #tpu.memory_space<vmem>>) attributes {dimension_semantics = [#tpu.dimension_semantics<parallel>], iteration_bounds = array<i64: 1>, scalar_prefetch = 0 : i64, scratch_operands = 0 : i64, tpu.core_type = #tpu.core_type<tc>, window_params = [{transform_indices = @transform_0, window_bounds = array<i64: 8, 784>}, {pipeline_mode = #tpu.pipeline_mode<synchronous>, transform_indices = @transform_1, window_bounds = array<i64: 784, 768>}, {pipeline_mode = #tpu.pipeline_mode<synchronous>, transform_indices = @transform_2, window_bounds = array<i64: 1, 768>}, {pipeline_mode = #tpu.pipeline_mode<synchronous>, transform_indices = @transform_3, window_bounds = array<i64: 768, 128>}, {pipeline_mode = #tpu.pipeline_mode<synchronous>, transform_indices = @transform_4, window_bounds = array<i64: 1, 128>}, {transform_indices = @transform_5, window_bounds = array<i64: 8, 128>}]} {
    %c0 = arith.constant 0 : index
    %c0_0 = arith.constant 0 : index
    %0 = vector.load %arg1[%c0, %c0_0] : memref<8x784xbf16, #tpu.memory_space<vmem>>, vector<8x784xbf16>
    %c0_1 = arith.constant 0 : index
    %c0_2 = arith.constant 0 : index
    %1 = vector.load %arg2[%c0_1, %c0_2] : memref<784x768xbf16, #tpu.memory_space<vmem>>, vector<784x768xbf16>
    %cst = arith.constant dense<0.000000e+00> : vector<8x768xf32>
    %2 = tpu.matmul %0, %1, %cst {dimension_numbers = #tpu.dot_dimension_numbers<[1], [0], [0], [1], [0, 0, 1, 1], [], []>} : vector<8x784xbf16>, vector<784x768xbf16>, vector<8x768xf32> -> vector<8x768xf32>
    %c0_3 = arith.constant 0 : index
    %c0_4 = arith.constant 0 : index
    %3 = vector.load %arg3[%c0_3, %c0_4] : memref<1x768xf32, #tpu.memory_space<vmem>>, vector<1x768xf32>
    %4 = vector.broadcast %3 : vector<1x768xf32> to vector<8x768xf32>
    %5 = arith.addf %2, %4 : vector<8x768xf32>
    %cst_5 = arith.constant 0.000000e+00 : f32
    %6 = vector.broadcast %cst_5 : f32 to vector<8x768xf32>
    %7 = arith.maximumf %5, %6 : vector<8x768xf32>
    %8 = arith.truncf %7 : vector<8x768xf32> to vector<8x768xbf16>
    %c0_6 = arith.constant 0 : index
    %c0_7 = arith.constant 0 : index
    %9 = vector.load %arg4[%c0_6, %c0_7] : memref<768x128xbf16, #tpu.memory_space<vmem>>, vector<768x128xbf16>
    %cst_8 = arith.constant dense<0.000000e+00> : vector<8x128xf32>
    %10 = tpu.matmul %8, %9, %cst_8 {dimension_numbers = #tpu.dot_dimension_numbers<[1], [0], [0], [1], [0, 0, 1, 1], [], []>} : vector<8x768xbf16>, vector<768x128xbf16>, vector<8x128xf32> -> vector<8x128xf32>
    %c0_9 = arith.constant 0 : index
    %c0_10 = arith.constant 0 : index
    %11 = vector.load %arg5[%c0_9, %c0_10] : memref<1x128xf32, #tpu.memory_space<vmem>>, vector<1x128xf32>
    %12 = vector.broadcast %11 : vector<1x128xf32> to vector<8x128xf32>
    %13 = arith.addf %10, %12 : vector<8x128xf32>
    %c0_11 = arith.constant 0 : index
    %c0_12 = arith.constant 0 : index
    %14 = vector.load %arg6[%c0_11, %c0_12] : memref<8x128xf32, #tpu.memory_space<vmem>>, vector<8x128xf32>
    tpu.vector_store %arg6[%c0_11, %c0_12], %13 {strides = array<i32>} : memref<8x128xf32, #tpu.memory_space<vmem>>, vector<8x128xf32>,
    return
  }
  func.func @transform_0(%arg0: i32) -> (i32, i32) {
    %c0_i32 = arith.constant 0 : i32
    %c0_i32_0 = arith.constant 0 : i32
    return %arg0, %c0_i32 : i32, i32
  }
  func.func @transform_1(%arg0: i32) -> (i32, i32) {
    %c0_i32 = arith.constant 0 : i32
    %c0_i32_0 = arith.constant 0 : i32
    %c0_i32_1 = arith.constant 0 : i32
    return %c0_i32, %c0_i32_0 : i32, i32
  }
  func.func @transform_2(%arg0: i32) -> (i32, i32) {
    %c0_i32 = arith.constant 0 : i32
    %c0_i32_0 = arith.constant 0 : i32
    %c0_i32_1 = arith.constant 0 : i32
    return %c0_i32, %c0_i32_0 : i32, i32
  }
  func.func @transform_3(%arg0: i32) -> (i32, i32) {
    %c0_i32 = arith.constant 0 : i32
    %c0_i32_0 = arith.constant 0 : i32
    %c0_i32_1 = arith.constant 0 : i32
    return %c0_i32, %c0_i32_0 : i32, i32
  }
  func.func @transform_4(%arg0: i32) -> (i32, i32) {
    %c0_i32 = arith.constant 0 : i32
    %c0_i32_0 = arith.constant 0 : i32
    %c0_i32_1 = arith.constant 0 : i32
    return %c0_i32, %c0_i32_0 : i32, i32
  }
  func.func @transform_5(%arg0: i32) -> (i32, i32) {
    %c0_i32 = arith.constant 0 : i32
    %c0_i32_0 = arith.constant 0 : i32
    return %arg0, %c0_i32 : i32, i32
  }
}

</mosaic_0001>

<bundles_post_ra>
// kernel: tpu_custom_call.1
= control target key start
LH: loop header
LB: loop body
LE: loop exit
PB: predicated region body
PF: predicated region fallthrough
CT: control target
= control target key end

     0   :  { %10 = vsyncpa [#allocation3], 0  ;;  %s4988_s0 = inlined_call_operand.hbm [shape: bf16[8,784], index: 0, kind: input, shape index: {}]   ;;  %s4989_s1 = inlined_call_operand.hbm [shape: bf16[784,768], index: 1, kind: input, shape index: {}]   ;;  %s4990_s2 = inlined_call_operand.hbm [shape: f32[1,768], index: 2, kind: input, shape index: {}]   ;;  %s4991_s3 = inlined_call_operand.hbm [shape: bf16[768,128], index: 3, kind: input, shape index: {}]   ;;  %s4992_s4 = inlined_call_operand.hbm [shape: f32[1,128], index: 4, kind: input, shape index: {}]   ;;  %s4993_s5 = inlined_call_operand.hbm [shape: f32[8,128], index: 5, kind: output, shape index: {}]  }
   0x1   :  { %11 = vsyncpa [#allocation6], 0 }
   0x2   :  { %12 = vsyncpa [#allocation9], 0  ;;  %s29_s20 = sshll.u32 %s4989_s1, 4  ;;  %s30_s20 = int_to_ptr.hbm [resolvable:$true] %s29_s20 }
   0x3   :  { %13 = vsyncpa [#allocation4], 0  ;;  %s4828_s21 = smov [#allocation5]   ;;  %s53_s25 = sshll.u32 %s4991_s3, 4  ;;  %s54_s25 = int_to_ptr.hbm [resolvable:$true] %s53_s25 }
   0x4   :  { %s31_s22 = sshll.u32 %s4828_s21, 4  ;;  %s4829_s26 = smov 384   ;;  %s32_s22 = int_to_ptr.vmem [resolvable:$true] %s31_s22 }
   0x5   :  { %s4830_s27 = smov 24   ;;  %s4831_s28 = smov [#allocation8]  }
   0x6   :  { %37 = dma.hbm_to_vmem [thread:$0]  %s30_s20, 37632, %s32_s22, [#allocation6], %s4829_s26, %s4829_s26, %s4830_s27  }
   0x7   :  { %s55_s29 = sshll.u32 %s4831_s28, 4  ;;  %s4832_s30 = smov 64   ;;  %s56_s29 = int_to_ptr.vmem [resolvable:$true] %s55_s29 }
   0x8   :  { %s4833_s6 = smov 4   ;;  %s19_s8 = sshll.u32 %s4988_s0, 4  ;;  %s20_s8 = int_to_ptr.hbm [resolvable:$true] %s19_s8 }
   0x9   :  { %61 = dma.hbm_to_vmem [thread:$0]  %s54_s25, 6144, %s56_s29, [#allocation9], %s4832_s30, %s4832_s30, %s4833_s6  }
   0xa   :  { %s4834_s9 = smov [#allocation2]   ;;  %s43_s12 = sshll.u32 %s4990_s2, 4  ;;  %s44_s12 = int_to_ptr.hbm [resolvable:$true] %s43_s12 }
   0xb   :  { %s21_s10 = sshll.u32 %s4834_s9, 4  ;;  %s4835_s13 = smov [#allocation7]   ;;  %s22_s10 = int_to_ptr.vmem [resolvable:$true] %s21_s10 }
   0xc   :  { %24 = dma.hbm_to_vmem [thread:$0]  %s20_s8, 448, %s22_s10, [#allocation3]  }
   0xd   :  { %s45_s14 = sshll.u32 %s4835_s13, 4  ;;  %s67_s17 = sshll.u32 %s4992_s4, 4  ;;  %s46_s14 = int_to_ptr.vmem [resolvable:$true] %s45_s14  ;;  %s68_s17 = int_to_ptr.hbm [resolvable:$true] %s67_s17 }
   0xe   :  { %48 = dma.hbm_to_vmem [thread:$0]  %s44_s12, 96, %s46_s14, [#allocation6]  }
   0xf   :  { %s4836_s0 = smov [#allocation10]  }
  0x10   :  { %s69_s18 = sshll.u32 %s4836_s0, 4  ;;  %s70_s18 = int_to_ptr.vmem [resolvable:$true] %s69_s18 }
  0x11   :  { %72 = dma.hbm_to_vmem [thread:$0]  %s68_s17, 16, %s70_s18, [#allocation9]  }
  0x12   :  { %4820 = dma.done.wait [#allocation3], 448  }
  0x13   :  { %4821 = vsyncadd [#allocation3], 4294966848 }
  0x14   :  { %4822 = dma.done.wait [#allocation6], 37728  }
  0x15   :  { %4823 = vsyncadd [#allocation6], 4294929568 }
  0x16   :  { %4824 = dma.done.wait [#allocation9], 6160  }
  0x17   :  { %4825 = vsyncadd [#allocation9], 4294961136  ;;  %v3118_v0 = vld [vmem:[#allocation5 + $0x150] sm:$0xf]  ;;  %v4367_v1 = vld [vmem:[#allocation5 + $0x164] sm:$0xf0] }
  0x18   :  { %v3310_v2 = vld [vmem:[#allocation5 + $0x2d0] sm:$0xf]  ;;  %v3119_v3 = vor.u32 %v4367_v1, %v3118_v0  ;;  %v4415_v4 = vld [vmem:[#allocation5 + $0x2e4] sm:$0xf0]  ;;  %v3094_v11 = vld [vmem:[#allocation5 + $0x120] sm:$0xf] }
  0x19   :  { %v3502_v5 = vld [vmem:[#allocation5 + $0x450] sm:$0xf]  ;;  %v4463_v6 = vld [vmem:[#allocation5 + $0x464] sm:$0xf0]  ;;  %v3311_v7 = vor.u32 %v4415_v4, %v3310_v2  ;;  %v4361_v13 = vld [vmem:[#allocation5 + $0x134] sm:$0xf0] }
  0x1a   :  { %v3503_v8 = vor.u32 %v4463_v6, %v3502_v5  ;;  %v3694_v9 = vld [vmem:[#allocation5 + $0x5d0] sm:$0xf]  ;;  %v4511_v10 = vld [vmem:[#allocation5 + $0x5e4] sm:$0xf0]  ;;  %1904 = vmatpush.bf16.msra.mxu0 %v3119_v3  ;;  %v3286_v14 = vld [vmem:[#allocation5 + $0x2a0] sm:$0xf]  ;;  %v3095_v16 = vor.u32 %v4361_v13, %v3094_v11 }
  0x1b   :  { %v3695_v12 = vor.u32 %v4511_v10, %v3694_v9  ;;  %v4409_v15 = vld [vmem:[#allocation5 + $0x2b4] sm:$0xf0]  ;;  %1917 = vmatpush.bf16.msra.mxu1 %v3311_v7  ;;  %v3478_v18 = vld [vmem:[#allocation5 + $0x420] sm:$0xf]  ;;  %v3070_v23 = vld [vmem:[#allocation5 + $0xf0] sm:$0xf] }
  0x1c   :  { %1930 = vmatpush.bf16.msra.mxu2 %v3503_v8  ;;  %v3287_v17 = vor.u32 %v4409_v15, %v3286_v14  ;;  %v4457_v19 = vld [vmem:[#allocation5 + $0x434] sm:$0xf0]  ;;  %v3670_v20 = vld [vmem:[#allocation5 + $0x5a0] sm:$0xf]  ;;  %v4355_v24 = vld [vmem:[#allocation5 + $0x104] sm:$0xf0] }
  0x1d   :  { %1943 = vmatpush.bf16.msra.mxu3 %v3695_v12  ;;  %v3479_v21 = vor.u32 %v4457_v19, %v3478_v18  ;;  %v4505_v22 = vld [vmem:[#allocation5 + $0x5b4] sm:$0xf0]  ;;  %v3262_v26 = vld [vmem:[#allocation5 + $0x270] sm:$0xf]  ;;  %v4403_v27 = vld [vmem:[#allocation5 + $0x284] sm:$0xf0]  ;;  %v3071_v29 = vor.u32 %v4355_v24, %v3070_v23 }
  0x1e   :  { %v3671_v25 = vor.u32 %v4505_v22, %v3670_v20  ;;  %v3454_v28 = vld [vmem:[#allocation5 + $0x3f0] sm:$0xf]  ;;  %1905 = vmatpush.bf16.msra.mxu0 %v3095_v16  ;;  %v4451_v30 = vld [vmem:[#allocation5 + $0x404] sm:$0xf0]  ;;  %v3263_v33 = vor.u32 %v4403_v27, %v3262_v26  ;;  %v3046_v35 = vld [vmem:[#allocation5 + $0xc0] sm:$0xf] }
  0x1f   :  { %v3646_v31 = vld [vmem:[#allocation5 + $0x570] sm:$0xf]  ;;  %v4499_v32 = vld [vmem:[#allocation5 + $0x584] sm:$0xf0]  ;;  %1918 = vmatpush.bf16.msra.mxu1 %v3287_v17  ;;  %v3455_v34 = vor.u32 %v4451_v30, %v3454_v28  ;;  %v4349_v36 = vld [vmem:[#allocation5 + $0xd4] sm:$0xf0] }
  0x20   :  { %1931 = vmatpush.bf16.msra.mxu2 %v3479_v21  ;;  %v3238_v37 = vld [vmem:[#allocation5 + $0x240] sm:$0xf]  ;;  %v3647_v38 = vor.u32 %v4499_v32, %v3646_v31  ;;  %v4397_v39 = vld [vmem:[#allocation5 + $0x254] sm:$0xf0]  ;;  %v3047_v44 = vor.u32 %v4349_v36, %v3046_v35  ;;  %v3022_v47 = vld [vmem:[#allocation5 + $0x90] sm:$0xf] }
  0x21   :  { %1944 = vmatpush.bf16.msra.mxu3 %v3671_v25  ;;  %v3430_v40 = vld [vmem:[#allocation5 + $0x3c0] sm:$0xf]  ;;  %v4445_v41 = vld [vmem:[#allocation5 + $0x3d4] sm:$0xf0]  ;;  %v3239_v45 = vor.u32 %v4397_v39, %v3238_v37  ;;  %v4343_v48 = vld [vmem:[#allocation5 + $0xa4] sm:$0xf0] }
  0x22   :  { %v3622_v42 = vld [vmem:[#allocation5 + $0x540] sm:$0xf]  ;;  %v4493_v43 = vld [vmem:[#allocation5 + $0x554] sm:$0xf0]  ;;  %1906 = vmatpush.bf16.msra.mxu0 %v3071_v29  ;;  %v3431_v46 = vor.u32 %v4445_v41, %v3430_v40  ;;  %v3214_v49 = vld [vmem:[#allocation5 + $0x210] sm:$0xf]  ;;  %v3023_v56 = vor.u32 %v4343_v48, %v3022_v47 }
  0x23   :  { %1919 = vmatpush.bf16.msra.mxu1 %v3263_v33  ;;  %v3623_v50 = vor.u32 %v4493_v43, %v3622_v42  ;;  %v4391_v51 = vld [vmem:[#allocation5 + $0x224] sm:$0xf0]  ;;  %v3406_v52 = vld [vmem:[#allocation5 + $0x390] sm:$0xf]  ;;  %v2998_v59 = vld [vmem:[#allocation5 + $0x60] sm:$0xf] }
  0x24   :  { %1932 = vmatpush.bf16.msra.mxu2 %v3455_v34  ;;  %v4439_v53 = vld [vmem:[#allocation5 + $0x3a4] sm:$0xf0]  ;;  %v3598_v54 = vld [vmem:[#allocation5 + $0x510] sm:$0xf]  ;;  %v3215_v57 = vor.u32 %v4391_v51, %v3214_v49  ;;  %v4337_v60 = vld [vmem:[#allocation5 + $0x74] sm:$0xf0] }
  0x25   :  { %1945 = vmatpush.bf16.msra.mxu3 %v3647_v38  ;;  %v4487_v55 = vld [vmem:[#allocation5 + $0x524] sm:$0xf0]  ;;  %v3407_v58 = vor.u32 %v4439_v53, %v3406_v52  ;;  %v3190_v61 = vld [vmem:[#allocation5 + $0x1e0] sm:$0xf]  ;;  %v4385_v63 = vld [vmem:[#allocation5 + $0x1f4] sm:$0xf0]  ;;  %v2999_v4 = vor.u32 %v4337_v60, %v2998_v59 }
  0x26   :  { %1907 = vmatpush.bf16.msra.mxu0 %v3047_v44  ;;  %v3599_v62 = vor.u32 %v4487_v55, %v3598_v54  ;;  %v3382_v0 = vld [vmem:[#allocation5 + $0x360] sm:$0xf]  ;;  %v4433_v1 = vld [vmem:[#allocation5 + $0x374] sm:$0xf0]  ;;  %v3191_v5 = vor.u32 %v4385_v63, %v3190_v61  ;;  %v2974_v7 = vld [vmem:[#allocation5 + $0x30] sm:$0xf] }
  0x27   :  { %1920 = vmatpush.bf16.msra.mxu1 %v3239_v45  ;;  %v3574_v2 = vld [vmem:[#allocation5 + $0x4e0] sm:$0xf]  ;;  %v4481_v3 = vld [vmem:[#allocation5 + $0x4f4] sm:$0xf0]  ;;  %v3383_v6 = vor.u32 %v4433_v1, %v3382_v0  ;;  %v4331_v8 = vld [vmem:[#allocation5 + $0x44] sm:$0xf0] }
  0x28   :  { %1933 = vmatpush.bf16.msra.mxu2 %v3431_v46  ;;  %v3166_v9 = vld [vmem:[#allocation5 + $0x1b0] sm:$0xf]  ;;  %v3575_v10 = vor.u32 %v4481_v3, %v3574_v2  ;;  %v4379_v11 = vld [vmem:[#allocation5 + $0x1c4] sm:$0xf0]  ;;  %v2975_v16 = vor.u32 %v4331_v8, %v2974_v7  ;;  %v2950_v17 = vld [vmem:[#allocation5] sm:$0xf] }
  0x29   :  { %1946 = vmatpush.bf16.msra.mxu3 %v3623_v50  ;;  %v3358_v12 = vld [vmem:[#allocation5 + $0x330] sm:$0xf]  ;;  %v4427_v13 = vld [vmem:[#allocation5 + $0x344] sm:$0xf0]  ;;  %v4325_v18 = vld [vmem:[#allocation5 + $0x14] sm:$0xf0]  ;;  %v3167_v20 = vor.u32 %v4379_v11, %v3166_v9 }
  0x2a   :  { %1908 = vmatpush.bf16.msra.mxu0 %v3023_v56  ;;  %v3550_v14 = vld [vmem:[#allocation5 + $0x4b0] sm:$0xf]  ;;  %v4475_v15 = vld [vmem:[#allocation5 + $0x4c4] sm:$0xf0]  ;;  %v3142_v19 = vld [vmem:[#allocation5 + $0x180] sm:$0xf]  ;;  %v3359_v21 = vor.u32 %v4427_v13, %v3358_v12  ;;  %v2951_v32 = vor.u32 %v4325_v18, %v2950_v17 }
  0x2b   :  { %1921 = vmatpush.bf16.msra.mxu1 %v3215_v57  ;;  %v4373_v22 = vld [vmem:[#allocation5 + $0x194] sm:$0xf0]  ;;  %v3334_v23 = vld [vmem:[#allocation5 + $0x300] sm:$0xf]  ;;  %v3551_v25 = vor.u32 %v4475_v15, %v3550_v14  ;;  %v95_v28 = vld [vmem:[#allocation2 + $0x8] sm:$0xff]  ;;  %vm1900_vm0 = vcmask 130048  }
  0x2c   :  { %1934 = vmatpush.bf16.msra.mxu2 %v3407_v58  ;;  %v4421_v24 = vld [vmem:[#allocation5 + $0x314] sm:$0xf0]  ;;  %v3526_v26 = vld [vmem:[#allocation5 + $0x480] sm:$0xf]  ;;  %v3886_v29 = vld [vmem:[#allocation5 + $0x750] sm:$0xf]  ;;  %v3143_v36 = vor.u32 %v4373_v22, %v3142_v19  ;;  %v412_v40 = vunpack.c.l.b16 %v95_v28  ;;  %v413_v41 = vunpack.c.h.b16 %v95_v28 }
  0x2d   :  { %1947 = vmatpush.bf16.msra.mxu3 %v3599_v62  ;;  %v4469_v27 = vld [vmem:[#allocation5 + $0x494] sm:$0xf0]  ;;  %v4559_v30 = vld [vmem:[#allocation5 + $0x764] sm:$0xf0]  ;;  %v4078_v31 = vld [vmem:[#allocation5 + $0x8d0] sm:$0xf]  ;;  %v3335_v37 = vor.u32 %v4421_v24, %v3334_v23 }
  0x2e   :  { %1909 = vmatpush.bf16.msra.mxu0 %v2999_v4  ;;  %v4607_v33 = vld [vmem:[#allocation5 + $0x8e4] sm:$0xf0]  ;;  %v4364_v34 = vld [vmem:[#allocation5 + $0x154] sm:$0xf]  ;;  %v3120_v35 = vld [vmem:[#allocation5 + $0x168] sm:$0xf0]  ;;  %v3527_v42 = vor.u32 %v4469_v27, %v3526_v26  ;;  %v3887_v43 = vor.u32 %v4559_v30, %v3886_v29  ;;  %v4883_v55 = vpack.c.b16 %v412_v40, %v412_v40  ;;  %v4885_v57 = vpack.c.b16 %v413_v41, %v413_v41 }
  0x2f   :  { %1922 = vmatpush.bf16.msra.mxu1 %v3191_v5  ;;  %v4102_v38 = vld [vmem:[#allocation5 + $0x900] sm:$0xf]  ;;  %v4613_v39 = vld [vmem:[#allocation5 + $0x914] sm:$0xf0]  ;;  %v4412_v44 = vld [vmem:[#allocation5 + $0x2d4] sm:$0xf]  ;;  %v4079_v46 = vor.u32 %v4607_v33, %v4078_v31  ;;  %v3123_v47 = vor.u32 %v4364_v34, %v3120_v35 }
  0x30   :  { %1935 = vmatpush.bf16.msra.mxu2 %v3383_v6  ;;  %v3312_v45 = vld [vmem:[#allocation5 + $0x2e8] sm:$0xf0]  ;;  %v3862_v48 = vld [vmem:[#allocation5 + $0x720] sm:$0xf]  ;;  %v4553_v49 = vld [vmem:[#allocation5 + $0x734] sm:$0xf0]  ;;  %v4103_v51 = vor.u32 %v4613_v39, %v4102_v38 }
  0x31   :  { %1948 = vmatpush.bf16.msra.mxu3 %v3575_v10  ;;  %v4054_v50 = vld [vmem:[#allocation5 + $0x8a0] sm:$0xf]  ;;  %v4601_v52 = vld [vmem:[#allocation5 + $0x8b4] sm:$0xf0]  ;;  %v4358_v53 = vld [vmem:[#allocation5 + $0x124] sm:$0xf]  ;;  %v3315_v58 = vor.u32 %v4412_v44, %v3312_v45  ;;  %v3863_v59 = vor.u32 %v4553_v49, %v3862_v48 }
  0x32   :  { %1910 = vmatpush.bf16.msra.mxu0 %v2975_v16  ;;  %v3096_v54 = vld [vmem:[#allocation5 + $0x138] sm:$0xf0]  ;;  %v94_v56 = vld [vmem:[#allocation2] sm:$0xff]  ;;  %v4055_v0 = vor.u32 %v4601_v52, %v4054_v50  ;;  %v3838_v2 = vld [vmem:[#allocation5 + $0x6f0] sm:$0xf]  ;;  %s4837_s2 = smov [#allocation11]  }
  0x33   :  { %1923 = vmatpush.bf16.msra.mxu1 %v3167_v20  ;;  %v4406_v60 = vld [vmem:[#allocation5 + $0x2a4] sm:$0xf]  ;;  %v3288_v61 = vld [vmem:[#allocation5 + $0x2b8] sm:$0xf0]  ;;  %v410_v62 = vunpack.c.l.b16 %v94_v56  ;;  %v411_v63 = vunpack.c.h.b16 %v94_v56  ;;  %v3099_v1 = vor.u32 %v4358_v53, %v3096_v54  ;;  %v4547_v3 = vld [vmem:[#allocation5 + $0x704] sm:$0xf0] }
  0x34   :  { %1936 = vmatpush.bf16.msra.mxu2 %v3359_v21  ;;  %v4030_v4 = vld [vmem:[#allocation5 + $0x870] sm:$0xf]  ;;  %v4595_v5 = vld [vmem:[#allocation5 + $0x884] sm:$0xf0]  ;;  %v4352_v6 = vld [vmem:[#allocation5 + $0xf4] sm:$0xf]  ;;  %v3291_v10 = vor.u32 %v4406_v60, %v3288_v61  ;;  %v3839_v11 = vor.u32 %v4547_v3, %v3838_v2 }
  0x35   :  { %1949 = vmatpush.bf16.msra.mxu3 %v3551_v25  ;;  %v3072_v7 = vld [vmem:[#allocation5 + $0x108] sm:$0xf0]  ;;  %v4887_v8 = vpack.c.b16 %v410_v62, %v410_v62  ;;  %v4889_v9 = vpack.c.b16 %v411_v63, %v411_v63  ;;  %v4400_v12 = vld [vmem:[#allocation5 + $0x274] sm:$0xf]  ;;  %v4031_v14 = vor.u32 %v4595_v5, %v4030_v4  ;;  %v3814_v16 = vld [vmem:[#allocation5 + $0x6c0] sm:$0xf] }
  0x36   :  { %1911 = vmatpush.bf16.msra.mxu0 %v2951_v32  ;;  %v3264_v13 = vld [vmem:[#allocation5 + $0x288] sm:$0xf0]  ;;  %v3075_v15 = vor.u32 %v4352_v6, %v3072_v7  ;;  %v4541_v17 = vld [vmem:[#allocation5 + $0x6d4] sm:$0xf0]  ;;  %v4006_v18 = vld [vmem:[#allocation5 + $0x840] sm:$0xf] }
  0x37   :  { %1924 = vmatpush.bf16.msra.mxu1 %v3143_v36  ;;  %v4589_v19 = vld [vmem:[#allocation5 + $0x854] sm:$0xf0]  ;;  %v4346_v20 = vld [vmem:[#allocation5 + $0xc4] sm:$0xf]  ;;  %v3048_v21 = vld [vmem:[#allocation5 + $0xd8] sm:$0xf0]  ;;  %v3267_v22 = vor.u32 %v4400_v12, %v3264_v13  ;;  %v3815_v23 = vor.u32 %v4541_v17, %v3814_v16 }
  0x38   :  { %1937 = vmatpush.bf16.msra.mxu2 %v3335_v37  ;;  %v4394_v24 = vld [vmem:[#allocation5 + $0x244] sm:$0xf]  ;;  %v3240_v25 = vld [vmem:[#allocation5 + $0x258] sm:$0xf0]  ;;  %v3790_v26 = vld [vmem:[#allocation5 + $0x690] sm:$0xf]  ;;  %v4007_v27 = vor.u32 %v4589_v19, %v4006_v18  ;;  %v3051_v28 = vor.u32 %v4346_v20, %v3048_v21 }
  0x39   :  { %1950 = vmatpush.bf16.msra.mxu3 %v3527_v42  ;;  %1912 = vmatmul.bf16.vlgmr.msra.gmra.mxu0 %v4887_v8  ;;  %v4535_v29 = vld [vmem:[#allocation5 + $0x6a4] sm:$0xf0]  ;;  %v3982_v30 = vld [vmem:[#allocation5 + $0x810] sm:$0xf]  ;;  %v4340_v32 = vld [vmem:[#allocation5 + $0x94] sm:$0xf]  ;;  %v3243_v36 = vor.u32 %v4394_v24, %v3240_v25 }
  0x3a   :  { %1956 = vmatpush.bf16.msrb.mxu0 %v3887_v43  ;;  %1925 = vmatmul.bf16.vlgmr.msra.gmra.mxu1 %v4889_v9  ;;  %v4583_v31 = vld [vmem:[#allocation5 + $0x824] sm:$0xf0]  ;;  %v3024_v33 = vld [vmem:[#allocation5 + $0xa8] sm:$0xf0]  ;;  %v97_v34 = vld [vmem:[#allocation2 + $0x18] sm:$0xf]  ;;  %v3791_v37 = vor.u32 %v4535_v29, %v3790_v26 }
  0x3b   :  { %1969 = vmatpush.bf16.msrb.mxu1 %v4079_v46  ;;  %1938 = vmatmul.bf16.vlgmr.msra.gmra.mxu2 %v4883_v55  ;;  %v416_v35 = vunpack.c.l.b16 %v97_v34  ;;  %v4388_v38 = vld [vmem:[#allocation5 + $0x214] sm:$0xf]  ;;  %v3216_v39 = vld [vmem:[#allocation5 + $0x228] sm:$0xf0]  ;;  %v3983_v40 = vor.u32 %v4583_v31, %v3982_v30  ;;  %v3027_v41 = vor.u32 %v4340_v32, %v3024_v33  ;;  %v3766_v42 = vld [vmem:[#allocation5 + $0x660] sm:$0xf] }
  0x3c   :  { %1989 = vmatpush.bf16.msrb.mxu2 %v4103_v51  ;;  %1951 = vmatmul.bf16.vlgmr.msra.gmra.mxu3 %v4885_v57  ;;  %v4529_v43 = vld [vmem:[#allocation5 + $0x674] sm:$0xf0]  ;;  %v3958_v44 = vld [vmem:[#allocation5 + $0x7e0] sm:$0xf]  ;;  %v4334_v46 = vld [vmem:[#allocation5 + $0x64] sm:$0xf]  ;;  %v3219_v49 = vor.u32 %v4388_v38, %v3216_v39 }
  0x3d   :  { %1995 = vmatpush.bf16.msrb.mxu3 %v3123_v47  ;;  %v4577_v45 = vld [vmem:[#allocation5 + $0x7f4] sm:$0xf0]  ;;  %v3000_v47 = vld [vmem:[#allocation5 + $0x78] sm:$0xf0]  ;;  %v4895_v48 = vpack.c.b16 %v416_v35, %v416_v35  ;;  %v3767_v50 = vor.u32 %v4529_v43, %v3766_v42  ;;  %v4382_v51 = vld [vmem:[#allocation5 + $0x1e4] sm:$0xf] }
  0x3e   :  { %1957 = vmatpush.bf16.msrb.mxu0 %v3863_v59  ;;  %v3192_v52 = vld [vmem:[#allocation5 + $0x1f8] sm:$0xf0]  ;;  %v3959_v53 = vor.u32 %v4577_v45, %v3958_v44  ;;  %v3003_v54 = vor.u32 %v4334_v46, %v3000_v47  ;;  %v3742_v56 = vld [vmem:[#allocation5 + $0x630] sm:$0xf]  ;;  %v4571_v60 = vld [vmem:[#allocation5 + $0x7c4] sm:$0xf0] }
  0x3f   :  { %1970 = vmatpush.bf16.msrb.mxu1 %v4055_v0  ;;  %v3934_v59 = vld [vmem:[#allocation5 + $0x7b0] sm:$0xf]  ;;  %v4328_v61 = vld [vmem:[#allocation5 + $0x34] sm:$0xf]  ;;  %v2976_v62 = vld [vmem:[#allocation5 + $0x48] sm:$0xf0]  ;;  %v3195_v0 = vor.u32 %v4382_v51, %v3192_v52 }
  0x40   :  { %2008 = vmatpush.bf16.msra.mxu2 %v3315_v58  ;;  %v4523_v58 = vld [vmem:[#allocation5 + $0x644] sm:$0xf0]  ;;  %v4376_v63 = vld [vmem:[#allocation5 + $0x1b4] sm:$0xf]  ;;  %v3168_v2 = vld [vmem:[#allocation5 + $0x1c8] sm:$0xf0]  ;;  %v3935_v5 = vor.u32 %v4571_v60, %v3934_v59  ;;  %v2979_v6 = vor.u32 %v4328_v61, %v2976_v62 }
  0x41   :  { %1996 = vmatpush.bf16.msrb.mxu3 %v3099_v1  ;;  %v3743_v1 = vor.u32 %v4523_v58, %v3742_v56  ;;  %v3718_v3 = vld [vmem:[#allocation5 + $0x600] sm:$0xf]  ;;  %v96_v4 = vld [vmem:[#allocation2 + $0x10] sm:$0xff]  ;;  %v4322_v12 = vld [vmem:[#allocation5 + $0x4] sm:$0xf]  ;;  %v3171_v19 = vor.u32 %v4376_v63, %v3168_v2  ;;  %s2934_s4 = sshll.u32 %s4837_s2, 4  ;;  %s2935_s4 = int_to_ptr.vmem [resolvable:$true] %s2934_s4 }
  0x42   :  { %1958 = vmatpush.bf16.msrb.mxu0 %v3839_v11  ;;  %v4517_v7 = vld [vmem:[#allocation5 + $0x614] sm:$0xf0]  ;;  %v2952_v13 = vld [vmem:[#allocation5 + $0x18] sm:$0xf0]  ;;  %v4508_v16 = vld [vmem:[#allocation5 + $0x5d4] sm:$0xf]  ;;  %v414_v18 = vunpack.c.l.b16 %v96_v4 }
  0x43   :  { %1971 = vmatpush.bf16.msrb.mxu1 %v4031_v14  ;;  %v4565_v11 = vld [vmem:[#allocation5 + $0x794] sm:$0xf0]  ;;  %v4460_v14 = vld [vmem:[#allocation5 + $0x454] sm:$0xf]  ;;  %v3696_v17 = vld [vmem:[#allocation5 + $0x5e8] sm:$0xf0]  ;;  %v3719_v20 = vor.u32 %v4517_v7, %v3718_v3  ;;  %v2955_v25 = vor.u32 %v4322_v12, %v2952_v13 }
  0x44   :  { %2009 = vmatpush.bf16.msra.mxu2 %v3291_v10  ;;  %v3910_v10 = vld [vmem:[#allocation5 + $0x780] sm:$0xf]  ;;  %v4556_v21 = vld [vmem:[#allocation5 + $0x754] sm:$0xf]  ;;  %v4370_v26 = vld [vmem:[#allocation5 + $0x184] sm:$0xf]  ;;  %v3699_v29 = vor.u32 %v4508_v16, %v3696_v17  ;;  %v4899_v34 = vpack.c.b16 %v414_v18, %v414_v18 }
  0x45   :  { %1997 = vmatpush.bf16.msrb.mxu3 %v3075_v15  ;;  %v3504_v15 = vld [vmem:[#allocation5 + $0x468] sm:$0xf0]  ;;  %v3911_v24 = vor.u32 %v4565_v11, %v3910_v10  ;;  %v4604_v30 = vld [vmem:[#allocation5 + $0x8d4] sm:$0xf]  ;;  %v4454_v32 = vld [vmem:[#allocation5 + $0x424] sm:$0xf] }
  0x46   :  { %1959 = vmatpush.bf16.msrb.mxu0 %v3815_v23  ;;  %v415_v23 = vunpack.c.h.b16 %v96_v4  ;;  %v4080_v31 = vld [vmem:[#allocation5 + $0x8e8] sm:$0xf0]  ;;  %v3480_v35 = vld [vmem:[#allocation5 + $0x438] sm:$0xf0]  ;;  %v4598_v45 = vld [vmem:[#allocation5 + $0x8a4] sm:$0xf] }
  0x47   :  { %1972 = vmatpush.bf16.msrb.mxu1 %v4007_v27  ;;  %v3144_v27 = vld [vmem:[#allocation5 + $0x198] sm:$0xf0]  ;;  %v4083_v42 = vor.u32 %v4604_v30, %v4080_v31  ;;  %v3483_v43 = vor.u32 %v4454_v32, %v3480_v35  ;;  %v4448_v47 = vld [vmem:[#allocation5 + $0x3f4] sm:$0xf]  ;;  %v3648_v52 = vld [vmem:[#allocation5 + $0x588] sm:$0xf0] }
  0x48   :  { %2010 = vmatpush.bf16.msra.mxu2 %v3267_v22  ;;  %v3888_v22 = vld [vmem:[#allocation5 + $0x768] sm:$0xf0]  ;;  %v3147_v38 = vor.u32 %v4370_v26, %v3144_v27  ;;  %v4901_v39 = vpack.c.b16 %v415_v23, %v415_v23  ;;  %v4056_v46 = vld [vmem:[#allocation5 + $0x8b8] sm:$0xf0]  ;;  %v4496_v51 = vld [vmem:[#allocation5 + $0x574] sm:$0xf] }
  0x49   :  { %1998 = vmatpush.bf16.msrb.mxu3 %v3051_v28  ;;  %v3507_v28 = vor.u32 %v4460_v14, %v3504_v15  ;;  %v3891_v33 = vor.u32 %v4556_v21, %v3888_v22  ;;  %v4059_v56 = vor.u32 %v4598_v45, %v4056_v46  ;;  %v3651_v59 = vor.u32 %v4496_v51, %v3648_v52  ;;  %v4592_v60 = vld [vmem:[#allocation5 + $0x874] sm:$0xf]  ;;  %v4032_v61 = vld [vmem:[#allocation5 + $0x888] sm:$0xf0]  ;;  %v4442_v62 = vld [vmem:[#allocation5 + $0x3c4] sm:$0xf] }
  0x4a   :  { %1960 = vmatpush.bf16.msrb.mxu0 %v3791_v37  ;;  %v3672_v37 = vld [vmem:[#allocation5 + $0x5b8] sm:$0xf0]  ;;  %v4538_v3 = vld [vmem:[#allocation5 + $0x6c4] sm:$0xf]  ;;  %v4436_v12 = vld [vmem:[#allocation5 + $0x394] sm:$0xf] }
  0x4b   :  { %1973 = vmatpush.bf16.msrb.mxu1 %v3983_v40  ;;  %4124 = vmatmul.msk.bf16.vlgmr.msrb.gmra.mxu2 %vm1900_vm0, %v4895_v48  ;;  %v4550_v40 = vld [vmem:[#allocation5 + $0x724] sm:$0xf]  ;;  %v3624_v2 = vld [vmem:[#allocation5 + $0x558] sm:$0xf0]  ;;  %v3408_v14 = vld [vmem:[#allocation5 + $0x3a8] sm:$0xf0] }
  0x4c   :  { %2011 = vmatpush.bf16.msra.mxu2 %v3243_v36  ;;  %v4502_v36 = vld [vmem:[#allocation5 + $0x5a4] sm:$0xf]  ;;  %v3816_v4 = vld [vmem:[#allocation5 + $0x6d8] sm:$0xf0]  ;;  %v4484_v15 = vld [vmem:[#allocation5 + $0x514] sm:$0xf] }
  0x4d   :  { %1999 = vmatpush.bf16.msrb.mxu3 %v3027_v41  ;;  %v3864_v41 = vld [vmem:[#allocation5 + $0x738] sm:$0xf0]  ;;  %v3675_v44 = vor.u32 %v4502_v36, %v3672_v37  ;;  %v4586_v10 = vld [vmem:[#allocation5 + $0x844] sm:$0xf]  ;;  %v3819_v13 = vor.u32 %v4538_v3, %v3816_v4  ;;  %v3600_v16 = vld [vmem:[#allocation5 + $0x528] sm:$0xf0] }
  0x4e   :  { %1961 = vmatpush.bf16.msrb.mxu0 %v3767_v50  ;;  %v3456_v50 = vld [vmem:[#allocation5 + $0x408] sm:$0xf0]  ;;  %v4008_v11 = vld [vmem:[#allocation5 + $0x858] sm:$0xf0]  ;;  %v4532_v17 = vld [vmem:[#allocation5 + $0x694] sm:$0xf]  ;;  %v3603_v21 = vor.u32 %v4484_v15, %v3600_v16 }
  0x4f   :  { %1974 = vmatpush.bf16.msrb.mxu1 %v3959_v53  ;;  %v4544_v53 = vld [vmem:[#allocation5 + $0x6f4] sm:$0xf]  ;;  %v3459_v58 = vor.u32 %v4448_v47, %v3456_v50  ;;  %v3792_v18 = vld [vmem:[#allocation5 + $0x6a8] sm:$0xf0]  ;;  %v3384_v26 = vld [vmem:[#allocation5 + $0x378] sm:$0xf0] }
  0x50   :  { %2012 = vmatpush.bf16.msra.mxu2 %v3219_v49  ;;  %v3867_v49 = vor.u32 %v4550_v40, %v3864_v41  ;;  %v4580_v22 = vld [vmem:[#allocation5 + $0x814] sm:$0xf]  ;;  %v3984_v23 = vld [vmem:[#allocation5 + $0x828] sm:$0xf0]  ;;  %v4478_v27 = vld [vmem:[#allocation5 + $0x4e4] sm:$0xf] }
  0x51   :  { %2000 = vmatpush.bf16.msrb.mxu3 %v3003_v54  ;;  %v3840_v54 = vld [vmem:[#allocation5 + $0x708] sm:$0xf0]  ;;  %v3768_v30 = vld [vmem:[#allocation5 + $0x678] sm:$0xf0]  ;;  %v3987_v31 = vor.u32 %v4580_v22, %v3984_v23  ;;  %v4574_v35 = vld [vmem:[#allocation5 + $0x7e4] sm:$0xf] }
  0x52   :  { %1962 = vmatpush.bf16.msrb.mxu0 %v3743_v1  ;;  %v3843_v63 = vor.u32 %v4544_v53, %v3840_v54  ;;  %v4490_v1 = vld [vmem:[#allocation5 + $0x544] sm:$0xf]  ;;  %v3960_v36 = vld [vmem:[#allocation5 + $0x7f8] sm:$0xf0]  ;;  %v4424_v37 = vld [vmem:[#allocation5 + $0x334] sm:$0xf] }
  0x53   :  { %1975 = vmatpush.bf16.msrb.mxu1 %v3935_v5  ;;  %v4035_v5 = vor.u32 %v4592_v60, %v4032_v61  ;;  %v3627_v7 = vor.u32 %v4490_v1, %v3624_v2  ;;  %v3360_v40 = vld [vmem:[#allocation5 + $0x348] sm:$0xf0]  ;;  %v4472_v41 = vld [vmem:[#allocation5 + $0x4b4] sm:$0xf]  ;;  %v3963_v45 = vor.u32 %v4574_v35, %v3960_v36  ;;  %v3336_v52 = vld [vmem:[#allocation5 + $0x318] sm:$0xf0] }
  0x54   :  { %2013 = vmatpush.bf16.msra.mxu2 %v3195_v0  ;;  %v3432_v0 = vld [vmem:[#allocation5 + $0x3d8] sm:$0xf0]  ;;  %v4568_v46 = vld [vmem:[#allocation5 + $0x7b4] sm:$0xf]  ;;  %v3936_v47 = vld [vmem:[#allocation5 + $0x7c8] sm:$0xf0]  ;;  %v3363_v50 = vor.u32 %v4424_v37, %v3360_v40 }
  0x55   :  { %2001 = vmatpush.bf16.msrb.mxu3 %v2979_v6  ;;  %v3435_v6 = vor.u32 %v4442_v62, %v3432_v0  ;;  %v4466_v53 = vld [vmem:[#allocation5 + $0x484] sm:$0xf]  ;;  %v3528_v54 = vld [vmem:[#allocation5 + $0x498] sm:$0xf0]  ;;  %v3126_v60 = vld [vmem:[#allocation5 + $0x158] sm:$0xf] }
  0x56   :  { %1963 = vmatpush.bf16.msrb.mxu0 %v3719_v20  ;;  %v3411_v20 = vor.u32 %v4436_v12, %v3408_v14  ;;  %v4368_v61 = vld [vmem:[#allocation5 + $0x16c] sm:$0xf0]  ;;  %v3318_v62 = vld [vmem:[#allocation5 + $0x2d8] sm:$0xf]  ;;  %v4610_v1 = vld [vmem:[#allocation5 + $0x904] sm:$0xf]  ;;  %v3531_v4 = vor.u32 %v4466_v53, %v3528_v54 }
  0x57   :  { %1976 = vmatpush.bf16.msrb.mxu1 %v3911_v24  ;;  %v4430_v24 = vld [vmem:[#allocation5 + $0x364] sm:$0xf]  ;;  %v4416_v0 = vld [vmem:[#allocation5 + $0x2ec] sm:$0xf0]  ;;  %v4104_v2 = vld [vmem:[#allocation5 + $0x918] sm:$0xf0] }
  0x58   :  { %2014 = vmatpush.bf16.msra.mxu2 %v3171_v19  ;;  %v4011_v19 = vor.u32 %v4586_v10, %v4008_v11  ;;  %v3387_v32 = vor.u32 %v4430_v24, %v3384_v26  ;;  %v3127_v11 = vor.u32 %v4368_v61, %v3126_v60  ;;  %v4464_v12 = vld [vmem:[#allocation5 + $0x46c] sm:$0xf0]  ;;  %v3319_v15 = vor.u32 %v4416_v0, %v3318_v62  ;;  %v3486_v24 = vld [vmem:[#allocation5 + $0x428] sm:$0xf]  ;;  %v4458_v26 = vld [vmem:[#allocation5 + $0x43c] sm:$0xf0] }
  0x59   :  { %2002 = vmatpush.bf16.msrb.mxu3 %v2955_v25  ;;  %1964 = vmatmul.bf16.vlgmr.msrb.gmra.mxu0 %v4899_v34  ;;  %v3795_v25 = vor.u32 %v4532_v17, %v3792_v18  ;;  %v4512_v14 = vld [vmem:[#allocation5 + $0x5ec] sm:$0xf0]  ;;  %v4107_v16 = vor.u32 %v4610_v1, %v4104_v2  ;;  %v3102_v17 = vld [vmem:[#allocation5 + $0x128] sm:$0xf]  ;;  %v4362_v18 = vld [vmem:[#allocation5 + $0x13c] sm:$0xf0]  ;;  %v3487_v35 = vor.u32 %v4458_v26, %v3486_v24 }
  0x5a   :  { %2021 = vmatpush.bf16.msra.mxu0 %v3507_v28  ;;  %1977 = vmatmul.bf16.vlgmr.msrb.gmra.mxu1 %v4901_v39  ;;  %v3576_v28 = vld [vmem:[#allocation5 + $0x4f8] sm:$0xf0]  ;;  %v3462_v37 = vld [vmem:[#allocation5 + $0x3f8] sm:$0xf]  ;;  %v4452_v40 = vld [vmem:[#allocation5 + $0x40c] sm:$0xf0] }
  0x5b   :  { %2034 = vmatpush.bf16.msra.mxu1 %v3699_v29  ;;  %v4526_v29 = vld [vmem:[#allocation5 + $0x664] sm:$0xf]  ;;  %v4446_v53 = vld [vmem:[#allocation5 + $0x3dc] sm:$0xf0]  ;;  %v3630_v54 = vld [vmem:[#allocation5 + $0x548] sm:$0xf] }
  0x5c   :  { %2015 = vmatpush.bf16.msra.mxu2 %v3147_v38  ;;  %2003 = vmatmul.bf16.vlgmr.msrb.gmra.mxu3 %v4887_v8  ;;  %v3771_v38 = vor.u32 %v4526_v29, %v3768_v30  ;;  %v3078_v30 = vld [vmem:[#allocation5 + $0xf8] sm:$0xf]  ;;  %v4344_v60 = vld [vmem:[#allocation5 + $0xac] sm:$0xf0]  ;;  %s2936_s21 = sshll.u32 %s4993_s5, 4  ;;  %s2937_s21 = int_to_ptr.hbm [resolvable:$true] %s2936_s21 }
  0x5d   :  { %2047 = vmatpush.bf16.msra.mxu3 %v3891_v33  ;;  %v3579_v33 = vor.u32 %v4478_v27, %v3576_v28  ;;  %v3678_v27 = vld [vmem:[#allocation5 + $0x5a8] sm:$0xf]  ;;  %v4506_v28 = vld [vmem:[#allocation5 + $0x5bc] sm:$0xf0]  ;;  %v3222_v61 = vld [vmem:[#allocation5 + $0x218] sm:$0xf] }
  0x5e   :  { %2022 = vmatpush.bf16.msra.mxu0 %v3483_v43  ;;  %v4520_v43 = vld [vmem:[#allocation5 + $0x634] sm:$0xf]  ;;  %v3679_v36 = vor.u32 %v4506_v28, %v3678_v27  ;;  %v4392_v62 = vld [vmem:[#allocation5 + $0x22c] sm:$0xf0]  ;;  %v3414_v1 = vld [vmem:[#allocation5 + $0x398] sm:$0xf] }
  0x5f   :  { %2035 = vmatpush.bf16.msra.mxu1 %v3675_v44  ;;  %2016 = vmatmul.bf16.vlgmr.msra.gmra.mxu2 %v4889_v9  ;;  %v3744_v44 = vld [vmem:[#allocation5 + $0x648] sm:$0xf0]  ;;  %v4380_v24 = vld [vmem:[#allocation5 + $0x1cc] sm:$0xf0]  ;;  %v3366_v27 = vld [vmem:[#allocation5 + $0x338] sm:$0xf] }
  0x60   :  { %2060 = vmatpush.bf16.msrb.mxu2 %v4083_v42  ;;  %v3552_v42 = vld [vmem:[#allocation5 + $0x4c8] sm:$0xf0]  ;;  %v4428_v28 = vld [vmem:[#allocation5 + $0x34c] sm:$0xf0] }
  0x61   :  { %2048 = vmatpush.bf16.msra.mxu3 %v3867_v49  ;;  %v4418_v49 = vld [vmem:[#allocation5 + $0x304] sm:$0xf]  ;;  %v3555_v51 = vor.u32 %v4472_v41, %v3552_v42  ;;  %v3654_v41 = vld [vmem:[#allocation5 + $0x578] sm:$0xf]  ;;  %v4500_v42 = vld [vmem:[#allocation5 + $0x58c] sm:$0xf0] }
  0x62   :  { %2023 = vmatpush.bf16.msra.mxu0 %v3459_v58  ;;  %v4514_v58 = vld [vmem:[#allocation5 + $0x604] sm:$0xf]  ;;  %v3339_v3 = vor.u32 %v4418_v49, %v3336_v52  ;;  %v3463_v49 = vor.u32 %v4452_v40, %v3462_v37  ;;  %v4374_v37 = vld [vmem:[#allocation5 + $0x19c] sm:$0xf0]  ;;  %v4560_v40 = vld [vmem:[#allocation5 + $0x76c] sm:$0xf0] }
  0x63   :  { %2036 = vmatpush.bf16.msra.mxu1 %v3651_v59  ;;  %v3720_v59 = vld [vmem:[#allocation5 + $0x618] sm:$0xf0] }
  0x64   :  { %2061 = vmatpush.bf16.msrb.mxu2 %v4059_v56  ;;  %v3747_v56 = vor.u32 %v4520_v43, %v3744_v44  ;;  %v3723_v10 = vor.u32 %v4514_v58, %v3720_v59  ;;  %v3054_v44 = vld [vmem:[#allocation5 + $0xc8] sm:$0xf]  ;;  %v3030_v59 = vld [vmem:[#allocation5 + $0x98] sm:$0xf] }
  0x65   :  { %2049 = vmatpush.bf16.msra.mxu3 %v3843_v63  ;;  %v3939_v63 = vor.u32 %v4568_v46, %v3936_v47  ;;  %v3246_v46 = vld [vmem:[#allocation5 + $0x248] sm:$0xf]  ;;  %v4398_v47 = vld [vmem:[#allocation5 + $0x25c] sm:$0xf0]  ;;  %v3031_v2 = vor.u32 %v4344_v60, %v3030_v59 }
  0x66   :  { %2024 = vmatpush.bf16.msra.mxu0 %v3435_v6  ;;  %v3912_v6 = vld [vmem:[#allocation5 + $0x798] sm:$0xf0]  ;;  %v3247_v58 = vor.u32 %v4398_v47, %v3246_v46  ;;  %v4422_v46 = vld [vmem:[#allocation5 + $0x31c] sm:$0xf0]  ;;  %v3870_v60 = vld [vmem:[#allocation5 + $0x728] sm:$0xf] }
  0x67   :  { %2037 = vmatpush.bf16.msra.mxu1 %v3627_v7  ;;  %v3510_v7 = vld [vmem:[#allocation5 + $0x458] sm:$0xf] }
  0x68   :  { %2062 = vmatpush.bf16.msrb.mxu2 %v4035_v5  ;;  %v4562_v5 = vld [vmem:[#allocation5 + $0x784] sm:$0xf]  ;;  %v3511_v22 = vor.u32 %v4464_v12, %v3510_v7  ;;  %v3006_v7 = vld [vmem:[#allocation5 + $0x68] sm:$0xf]  ;;  %v4386_v12 = vld [vmem:[#allocation5 + $0x1fc] sm:$0xf0] }
  0x69   :  { %2050 = vmatpush.bf16.msra.mxu3 %v3819_v13  ;;  %v3702_v13 = vld [vmem:[#allocation5 + $0x5d8] sm:$0xf] }
  0x6a   :  { %2025 = vmatpush.bf16.msra.mxu0 %v3411_v20  ;;  %v3294_v20 = vld [vmem:[#allocation5 + $0x2a8] sm:$0xf]  ;;  %v3703_v23 = vor.u32 %v4512_v14, %v3702_v13 }
  0x6b   :  { %2038 = vmatpush.bf16.msra.mxu1 %v3603_v21  ;;  %v4410_v21 = vld [vmem:[#allocation5 + $0x2bc] sm:$0xf0] }
  0x6c   :  { %2063 = vmatpush.bf16.msrb.mxu2 %v4011_v19  ;;  %v3915_v19 = vor.u32 %v4562_v5, %v3912_v6  ;;  %v3295_v29 = vor.u32 %v4410_v21, %v3294_v20  ;;  %v4488_v5 = vld [vmem:[#allocation5 + $0x52c] sm:$0xf0]  ;;  %v3223_v6 = vor.u32 %v4392_v62, %v3222_v61  ;;  %v2982_v21 = vld [vmem:[#allocation5 + $0x38] sm:$0xf]  ;;  %v4554_v61 = vld [vmem:[#allocation5 + $0x73c] sm:$0xf0] }
  0x6d   :  { %2051 = vmatpush.bf16.msra.mxu3 %v3795_v25  ;;  %v3103_v25 = vor.u32 %v4362_v18, %v3102_v17  ;;  %v4434_v17 = vld [vmem:[#allocation5 + $0x37c] sm:$0xf0]  ;;  %v3582_v18 = vld [vmem:[#allocation5 + $0x4e8] sm:$0xf] }
  0x6e   :  { %2026 = vmatpush.bf16.msra.mxu0 %v3387_v32  ;;  %v3270_v32 = vld [vmem:[#allocation5 + $0x278] sm:$0xf] }
  0x6f   :  { %2039 = vmatpush.bf16.msra.mxu1 %v3579_v33  ;;  %v4404_v33 = vld [vmem:[#allocation5 + $0x28c] sm:$0xf0] }
  0x70   :  { %2064 = vmatpush.bf16.msrb.mxu2 %v3987_v31  ;;  %v4356_v31 = vld [vmem:[#allocation5 + $0x10c] sm:$0xf0]  ;;  %v3271_v43 = vor.u32 %v4404_v33, %v3270_v32  ;;  %v2958_v32 = vld [vmem:[#allocation5 + $0x8] sm:$0xf] }
  0x71   :  { %2052 = vmatpush.bf16.msra.mxu3 %v3771_v38  ;;  %v3079_v38 = vor.u32 %v4356_v31, %v3078_v30  ;;  %v3558_v30 = vld [vmem:[#allocation5 + $0x4b8] sm:$0xf]  ;;  %v4476_v31 = vld [vmem:[#allocation5 + $0x4cc] sm:$0xf0] }
  0x72   :  { %2027 = vmatpush.bf16.msra.mxu0 %v3363_v50  ;;  %v3655_v50 = vor.u32 %v4500_v42, %v3654_v41  ;;  %v4086_v41 = vld [vmem:[#allocation5 + $0x8d8] sm:$0xf]  ;;  %v3367_v42 = vor.u32 %v4428_v28, %v3366_v27  ;;  %v4014_v27 = vld [vmem:[#allocation5 + $0x848] sm:$0xf]  ;;  %v4590_v28 = vld [vmem:[#allocation5 + $0x85c] sm:$0xf0] }
  0x73   :  { %2040 = vmatpush.bf16.msra.mxu1 %v3555_v51  ;;  %v3438_v51 = vld [vmem:[#allocation5 + $0x3c8] sm:$0xf] }
  0x74   :  { %2065 = vmatpush.bf16.msrb.mxu2 %v3963_v45  ;;  %v4350_v45 = vld [vmem:[#allocation5 + $0xdc] sm:$0xf0] }
  0x75   :  { %2053 = vmatpush.bf16.msra.mxu3 %v3747_v56  ;;  %v3055_v52 = vor.u32 %v4350_v45, %v3054_v44  ;;  %v4494_v56 = vld [vmem:[#allocation5 + $0x55c] sm:$0xf0]  ;;  %v4608_v44 = vld [vmem:[#allocation5 + $0x8ec] sm:$0xf0]  ;;  %v3342_v45 = vld [vmem:[#allocation5 + $0x308] sm:$0xf] }
  0x76   :  { %2028 = vmatpush.bf16.msra.mxu0 %v3339_v3  ;;  %v3631_v0 = vor.u32 %v4494_v56, %v3630_v54  ;;  %v4440_v3 = vld [vmem:[#allocation5 + $0x3ac] sm:$0xf0]  ;;  %v3128_v54 = vld [vmem:[#allocation5 + $0x170] sm:$0xf0]  ;;  %v4110_v56 = vld [vmem:[#allocation5 + $0x908] sm:$0xf]  ;;  %v4087_v59 = vor.u32 %v4608_v44, %v4086_v41  ;;  %v3343_v62 = vor.u32 %v4422_v46, %v3342_v45 }
  0x77   :  { %2041 = vmatpush.bf16.msra.mxu1 %v3531_v4  ;;  %v3606_v4 = vld [vmem:[#allocation5 + $0x518] sm:$0xf]  ;;  %v3415_v13 = vor.u32 %v4440_v3, %v3414_v1  ;;  %v4602_v1 = vld [vmem:[#allocation5 + $0x8bc] sm:$0xf0]  ;;  %v4395_v44 = vld [vmem:[#allocation5 + $0x24c] sm:$0xf] }
  0x78   :  { %2066 = vmatpush.bf16.msrb.mxu2 %v3939_v63  ;;  %v3439_v63 = vor.u32 %v4446_v53, %v3438_v51  ;;  %v3607_v14 = vor.u32 %v4488_v5, %v3606_v4  ;;  %v4365_v51 = vld [vmem:[#allocation5 + $0x15c] sm:$0xf]  ;;  %v3320_v5 = vld [vmem:[#allocation5 + $0x2f0] sm:$0xf0]  ;;  %v3990_v41 = vld [vmem:[#allocation5 + $0x818] sm:$0xf] }
  0x79   :  { %2054 = vmatpush.bf16.msra.mxu3 %v3723_v10  ;;  %2029 = vmatmul.bf16.vlgmr.msra.gmra.mxu0 %v4883_v55  ;;  %v4338_v10 = vld [vmem:[#allocation5 + $0x7c] sm:$0xf0]  ;;  %v4413_v4 = vld [vmem:[#allocation5 + $0x2dc] sm:$0xf]  ;;  %v3248_v45 = vld [vmem:[#allocation5 + $0x260] sm:$0xf0] }
  0x7a   :  { %2080 = vmatpush.bf16.msrb.mxu0 %v4107_v16  ;;  %2042 = vmatmul.bf16.vlgmr.msra.gmra.mxu1 %v4885_v57  ;;  %v3007_v16 = vor.u32 %v4338_v10, %v3006_v7  ;;  %v4359_v7 = vld [vmem:[#allocation5 + $0x12c] sm:$0xf]  ;;  %v3104_v10 = vld [vmem:[#allocation5 + $0x140] sm:$0xf0] }
  0x7b   :  { %2086 = vmatpush.bf16.msrb.mxu1 %v3127_v11  ;;  %v3198_v11 = vld [vmem:[#allocation5 + $0x1e8] sm:$0xf] }
  0x7c   :  { %2067 = vmatpush.bf16.msrb.mxu2 %v3915_v19  ;;  %2055 = vmatmul.bf16.vlgmr.msra.gmra.mxu3 %v4899_v34  ;;  %v4482_v19 = vld [vmem:[#allocation5 + $0x4fc] sm:$0xf0]  ;;  %v3199_v20 = vor.u32 %v4386_v12, %v3198_v11  ;;  %v3846_v12 = vld [vmem:[#allocation5 + $0x6f8] sm:$0xf] }
  0x7d   :  { %2099 = vmatpush.bf16.msrb.mxu3 %v3319_v15  ;;  %v3390_v15 = vld [vmem:[#allocation5 + $0x368] sm:$0xf]  ;;  %v3583_v26 = vor.u32 %v4482_v19, %v3582_v18  ;;  %v4407_v18 = vld [vmem:[#allocation5 + $0x2ac] sm:$0xf]  ;;  %v3296_v19 = vld [vmem:[#allocation5 + $0x2c0] sm:$0xf0] }
  0x7e   :  { %2112 = vmatpush.bf16.msra.mxu0 %v3511_v22  ;;  %v4332_v22 = vld [vmem:[#allocation5 + $0x4c] sm:$0xf0] }
  0x7f   :  { %2087 = vmatpush.bf16.msrb.mxu1 %v3103_v25  ;;  %2068 = vmatmul.bf16.vlgmr.msrb.gmra.mxu2 %v4901_v39  ;;  %v3391_v25 = vor.u32 %v4434_v17, %v3390_v15  ;;  %v4038_v15 = vld [vmem:[#allocation5 + $0x878] sm:$0xf]  ;;  %v3107_v17 = vor.u32 %v4359_v7, %v3104_v10  ;;  %v4383_v7 = vld [vmem:[#allocation5 + $0x1ec] sm:$0xf]  ;;  %v3200_v10 = vld [vmem:[#allocation5 + $0x200] sm:$0xf0] }
  0x80   :  { %2125 = vmatpush.bf16.msra.mxu2 %v3703_v23  ;;  %v3174_v23 = vld [vmem:[#allocation5 + $0x1b8] sm:$0xf] }
  0x81   :  { %2100 = vmatpush.bf16.msrb.mxu3 %v3295_v29  ;;  %v2983_v29 = vor.u32 %v4332_v22, %v2982_v21  ;;  %v3175_v33 = vor.u32 %v4380_v24, %v3174_v23  ;;  %v4353_v21 = vld [vmem:[#allocation5 + $0xfc] sm:$0xf]  ;;  %v3080_v22 = vld [vmem:[#allocation5 + $0x110] sm:$0xf0]  ;;  %v3822_v24 = vld [vmem:[#allocation5 + $0x6c8] sm:$0xf] }
  0x82   :  { %2113 = vmatpush.bf16.msra.mxu0 %v3487_v35  ;;  %v4326_v35 = vld [vmem:[#allocation5 + $0x1c] sm:$0xf0] }
  0x83   :  { %2088 = vmatpush.bf16.msrb.mxu1 %v3079_v38  ;;  %v3894_v38 = vld [vmem:[#allocation5 + $0x758] sm:$0xf]  ;;  %v2959_v47 = vor.u32 %v4326_v35, %v2958_v32  ;;  %v3056_v35 = vld [vmem:[#allocation5 + $0xe0] sm:$0xf0] }
  0x84   :  { %2126 = vmatpush.bf16.msra.mxu2 %v3679_v36  ;;  %v3150_v36 = vld [vmem:[#allocation5 + $0x188] sm:$0xf]  ;;  %v3895_v53 = vor.u32 %v4560_v40, %v3894_v38  ;;  %v4536_v38 = vld [vmem:[#allocation5 + $0x6ac] sm:$0xf0] }
  0x85   :  { %2101 = vmatpush.bf16.msrb.mxu3 %v3271_v43  ;;  %v3559_v43 = vor.u32 %v4476_v31, %v3558_v30  ;;  %v4401_v30 = vld [vmem:[#allocation5 + $0x27c] sm:$0xf]  ;;  %v3272_v31 = vld [vmem:[#allocation5 + $0x290] sm:$0xf0] }
  0x86   :  { %2114 = vmatpush.bf16.msra.mxu0 %v3463_v49  ;;  %v3534_v49 = vld [vmem:[#allocation5 + $0x488] sm:$0xf]  ;;  %v3275_v40 = vor.u32 %v4401_v30, %v3272_v31 }
  0x87   :  { %2089 = vmatpush.bf16.msrb.mxu1 %v3055_v52  ;;  %v3151_v52 = vor.u32 %v4374_v37, %v3150_v36  ;;  %v4015_v36 = vor.u32 %v4590_v28, %v4014_v27  ;;  %v3798_v37 = vld [vmem:[#allocation5 + $0x698] sm:$0xf]  ;;  %v4323_v28 = vld [vmem:[#allocation5 + $0xc] sm:$0xf] }
  0x88   :  { %2127 = vmatpush.bf16.msra.mxu2 %v3655_v50  ;;  %v4470_v50 = vld [vmem:[#allocation5 + $0x49c] sm:$0xf0]  ;;  %v3799_v46 = vor.u32 %v4536_v38, %v3798_v37  ;;  %v4455_v37 = vld [vmem:[#allocation5 + $0x42c] sm:$0xf]  ;;  %v3488_v38 = vld [vmem:[#allocation5 + $0x440] sm:$0xf0] }
  0x89   :  { %2102 = vmatpush.bf16.msrb.mxu3 %v3247_v58  ;;  %4125 = vmatmul.msk.bf16.vlgmr.msrb.gmra.mxu0 %vm1900_vm0, %v4895_v48  ;;  %v4614_v58 = vld [vmem:[#allocation5 + $0x91c] sm:$0xf0] }
  0x8a   :  { %2115 = vmatpush.bf16.msra.mxu0 %v3439_v63  ;;  %v3535_v63 = vor.u32 %v4470_v50, %v3534_v49  ;;  %v4111_v3 = vor.u32 %v4614_v58, %v4110_v56  ;;  %v3032_v49 = vld [vmem:[#allocation5 + $0xb0] sm:$0xf0]  ;;  %v4578_v56 = vld [vmem:[#allocation5 + $0x7fc] sm:$0xf0] }
  0x8b   :  { %2090 = vmatpush.bf16.msrb.mxu1 %v3031_v2  ;;  %v3131_v2 = vor.u32 %v4365_v51, %v3128_v54  ;;  %v3774_v51 = vld [vmem:[#allocation5 + $0x668] sm:$0xf] }
  0x8c   :  { %2128 = vmatpush.bf16.msra.mxu2 %v3631_v0  ;;  %v4062_v0 = vld [vmem:[#allocation5 + $0x8a8] sm:$0xf] }
  0x8d   :  { %2103 = vmatpush.bf16.msrb.mxu3 %v3223_v6  ;;  %v3871_v6 = vor.u32 %v4554_v61, %v3870_v60  ;;  %v4063_v11 = vor.u32 %v4602_v1, %v4062_v0  ;;  %v3966_v54 = vld [vmem:[#allocation5 + $0x7e8] sm:$0xf]  ;;  %v3224_v60 = vld [vmem:[#allocation5 + $0x230] sm:$0xf0]  ;;  %v3750_v1 = vld [vmem:[#allocation5 + $0x638] sm:$0xf] }
  0x8e   :  { %2116 = vmatpush.bf16.msra.mxu0 %v3415_v13  ;;  %v4548_v13 = vld [vmem:[#allocation5 + $0x70c] sm:$0xf0]  ;;  %v3967_v0 = vor.u32 %v4578_v56, %v3966_v54  ;;  %v4449_v54 = vld [vmem:[#allocation5 + $0x3fc] sm:$0xf]  ;;  %v3464_v56 = vld [vmem:[#allocation5 + $0x410] sm:$0xf0] }
  0x8f   :  { %2091 = vmatpush.bf16.msrb.mxu1 %v3007_v16  ;;  %v4596_v16 = vld [vmem:[#allocation5 + $0x88c] sm:$0xf0] }
  0x90   :  { %2129 = vmatpush.bf16.msra.mxu2 %v3607_v14  ;;  %v3323_v14 = vor.u32 %v4413_v4, %v3320_v5  ;;  %v4039_v23 = vor.u32 %v4596_v16, %v4038_v15  ;;  %v3942_v4 = vld [vmem:[#allocation5 + $0x7b8] sm:$0xf]  ;;  %v4572_v5 = vld [vmem:[#allocation5 + $0x7cc] sm:$0xf0]  ;;  %v4518_v16 = vld [vmem:[#allocation5 + $0x61c] sm:$0xf0] }
  0x91   :  { %2104 = vmatpush.bf16.msrb.mxu3 %v3199_v20  ;;  %v3847_v20 = vor.u32 %v4548_v13, %v3846_v12  ;;  %v4329_v12 = vld [vmem:[#allocation5 + $0x3c] sm:$0xf]  ;;  %v2984_v13 = vld [vmem:[#allocation5 + $0x50] sm:$0xf0]  ;;  %v3943_v15 = vor.u32 %v4572_v5, %v3942_v4  ;;  %v4443_v4 = vld [vmem:[#allocation5 + $0x3cc] sm:$0xf] }
  0x92   :  { %2117 = vmatpush.bf16.msra.mxu0 %v3391_v25  ;;  %v4542_v25 = vld [vmem:[#allocation5 + $0x6dc] sm:$0xf0]  ;;  %v3440_v5 = vld [vmem:[#allocation5 + $0x3e0] sm:$0xf0] }
  0x93   :  { %2092 = vmatpush.bf16.msrb.mxu1 %v2983_v29  ;;  %v3083_v29 = vor.u32 %v4353_v21, %v3080_v22  ;;  %v3823_v32 = vor.u32 %v4542_v25, %v3822_v24  ;;  %v3512_v21 = vld [vmem:[#allocation5 + $0x470] sm:$0xf0]  ;;  %v4509_v22 = vld [vmem:[#allocation5 + $0x5dc] sm:$0xf] }
  0x94   :  { %2130 = vmatpush.bf16.msra.mxu2 %v3583_v26  ;;  %v3299_v26 = vor.u32 %v4407_v18, %v3296_v19  ;;  %v4566_v18 = vld [vmem:[#allocation5 + $0x79c] sm:$0xf0]  ;;  %v3203_v19 = vor.u32 %v4383_v7, %v3200_v10  ;;  %v3704_v24 = vld [vmem:[#allocation5 + $0x5f0] sm:$0xf0]  ;;  %v4377_v25 = vld [vmem:[#allocation5 + $0x1bc] sm:$0xf] }
  0x95   :  { %2105 = vmatpush.bf16.msrb.mxu3 %v3175_v33  ;;  %v4347_v33 = vld [vmem:[#allocation5 + $0xcc] sm:$0xf]  ;;  %v3632_v10 = vld [vmem:[#allocation5 + $0x560] sm:$0xf0] }
  0x96   :  { %2118 = vmatpush.bf16.msra.mxu0 %v3367_v42  ;;  %v4584_v42 = vld [vmem:[#allocation5 + $0x82c] sm:$0xf0]  ;;  %v4491_v7 = vld [vmem:[#allocation5 + $0x54c] sm:$0xf] }
  0x97   :  { %2093 = vmatpush.bf16.msrb.mxu1 %v2959_v47  ;;  %v4341_v47 = vld [vmem:[#allocation5 + $0x9c] sm:$0xf]  ;;  %v3991_v50 = vor.u32 %v4584_v42, %v3990_v41  ;;  %v3680_v42 = vld [vmem:[#allocation5 + $0x5c0] sm:$0xf0] }
  0x98   :  { %2131 = vmatpush.bf16.msra.mxu2 %v3559_v43  ;;  %v3059_v43 = vor.u32 %v4347_v33, %v3056_v35  ;;  %v3035_v58 = vor.u32 %v4341_v47, %v3032_v49  ;;  %v3896_v33 = vld [vmem:[#allocation5 + $0x770] sm:$0xf0]  ;;  %v3707_v35 = vor.u32 %v4509_v22, %v3704_v24  ;;  %v3491_v49 = vor.u32 %v4455_v37, %v3488_v38  ;;  %v4485_v22 = vld [vmem:[#allocation5 + $0x51c] sm:$0xf]  ;;  %v3584_v37 = vld [vmem:[#allocation5 + $0x500] sm:$0xf0] }
  0x99   :  { %2106 = vmatpush.bf16.msrb.mxu3 %v3151_v52  ;;  %v4530_v52 = vld [vmem:[#allocation5 + $0x67c] sm:$0xf0]  ;;  %v4088_v47 = vld [vmem:[#allocation5 + $0x8f0] sm:$0xf0] }
  0x9a   :  { %2119 = vmatpush.bf16.msra.mxu0 %v3343_v62  ;;  %2094 = vmatmul.bf16.vlgmr.msrb.gmra.mxu1 %v4887_v8  ;;  %v3775_v61 = vor.u32 %v4530_v52, %v3774_v51  ;;  %v4335_v62 = vld [vmem:[#allocation5 + $0x6c] sm:$0xf]  ;;  %v3872_v51 = vld [vmem:[#allocation5 + $0x740] sm:$0xf0] }
  0x9b   :  { %2138 = vmatpush.bf16.msra.mxu1 %v3895_v53  ;;  %v3251_v53 = vor.u32 %v4395_v44, %v3248_v45  ;;  %v3152_v44 = vld [vmem:[#allocation5 + $0x1a0] sm:$0xf0] }
  0x9c   :  { %2132 = vmatpush.bf16.msra.mxu2 %v3535_v63  ;;  %2107 = vmatmul.bf16.vlgmr.msrb.gmra.mxu3 %v4889_v9  ;;  %v3008_v63 = vld [vmem:[#allocation5 + $0x80] sm:$0xf0] }
  0x9d   :  { %2151 = vmatpush.bf16.msra.mxu3 %v4087_v59  ;;  %2120 = vmatmul.bf16.vlgmr.msra.gmra.mxu0 %v4883_v55  ;;  %v4389_v59 = vld [vmem:[#allocation5 + $0x21c] sm:$0xf] }
  0x9e   :  { %2171 = vmatpush.bf16.msrb.mxu0 %v4111_v3  ;;  %v3227_v3 = vor.u32 %v4389_v59, %v3224_v60  ;;  %v4497_v59 = vld [vmem:[#allocation5 + $0x57c] sm:$0xf]  ;;  %v3656_v60 = vld [vmem:[#allocation5 + $0x590] sm:$0xf0] }
  0x9f   :  { %2139 = vmatpush.bf16.msra.mxu1 %v3871_v6  ;;  %2133 = vmatmul.bf16.vlgmr.msra.gmra.mxu2 %v4885_v57  ;;  %v3011_v6 = vor.u32 %v4335_v62, %v3008_v63  ;;  %v4599_v62 = vld [vmem:[#allocation5 + $0x8ac] sm:$0xf]  ;;  %v4064_v63 = vld [vmem:[#allocation5 + $0x8c0] sm:$0xf0] }
  0xa0   :  { %2177 = vmatpush.bf16.msrb.mxu2 %v3131_v2  ;;  %v4524_v2 = vld [vmem:[#allocation5 + $0x64c] sm:$0xf0] }
  0xa1   :  { %2152 = vmatpush.bf16.msra.mxu3 %v4063_v11  ;;  %v3751_v11 = vor.u32 %v4524_v2, %v3750_v1  ;;  %v4545_v1 = vld [vmem:[#allocation5 + $0x6fc] sm:$0xf]  ;;  %v3848_v2 = vld [vmem:[#allocation5 + $0x710] sm:$0xf0] }
  0xa2   :  { %2190 = vmatpush.bf16.msra.mxu0 %v3323_v14  ;;  %v3726_v14 = vld [vmem:[#allocation5 + $0x608] sm:$0xf] }
  0xa3   :  { %2140 = vmatpush.bf16.msra.mxu1 %v3847_v20  ;;  %v4461_v20 = vld [vmem:[#allocation5 + $0x45c] sm:$0xf]  ;;  %v3727_v27 = vor.u32 %v4518_v16, %v3726_v14  ;;  %v3443_v14 = vor.u32 %v4443_v4, %v3440_v5  ;;  %v3824_v16 = vld [vmem:[#allocation5 + $0x6e0] sm:$0xf0] }
  0xa4   :  { %2178 = vmatpush.bf16.msrb.mxu2 %v3107_v17  ;;  %v3918_v17 = vld [vmem:[#allocation5 + $0x788] sm:$0xf]  ;;  %v3515_v31 = vor.u32 %v4461_v20, %v3512_v21  ;;  %v3416_v20 = vld [vmem:[#allocation5 + $0x3b0] sm:$0xf0] }
  0xa5   :  { %2153 = vmatpush.bf16.msra.mxu3 %v4039_v23  ;;  %v2987_v23 = vor.u32 %v4329_v12, %v2984_v13  ;;  %v3919_v30 = vor.u32 %v4566_v18, %v3918_v17  ;;  %v4593_v12 = vld [vmem:[#allocation5 + $0x87c] sm:$0xf]  ;;  %v4040_v13 = vld [vmem:[#allocation5 + $0x890] sm:$0xf0]  ;;  %v3635_v18 = vor.u32 %v4491_v7, %v3632_v10  ;;  %v4467_v7 = vld [vmem:[#allocation5 + $0x48c] sm:$0xf] }
  0xa6   :  { %2191 = vmatpush.bf16.msra.mxu0 %v3299_v26  ;;  %v3176_v26 = vld [vmem:[#allocation5 + $0x1d0] sm:$0xf0]  ;;  %v4043_v21 = vor.u32 %v4593_v12, %v4040_v13  ;;  %v3536_v10 = vld [vmem:[#allocation5 + $0x4a0] sm:$0xf0]  ;;  %v3134_v12 = vld [vmem:[#allocation5 + $0x160] sm:$0xf] }
  0xa7   :  { %2141 = vmatpush.bf16.msra.mxu1 %v3823_v32  ;;  %v4557_v32 = vld [vmem:[#allocation5 + $0x75c] sm:$0xf]  ;;  %v4922_v17 = vld [vmem:[#allocation7] sm:$0x3f]  ;;  %v4611_v13 = vld [vmem:[#allocation5 + $0x90c] sm:$0xf] }
  0xa8   :  { %2179 = vmatpush.bf16.msrb.mxu2 %v3083_v29  ;;  %v2960_v29 = vld [vmem:[#allocation5 + $0x20] sm:$0xf0]  ;;  %v3899_v45 = vor.u32 %v4557_v32, %v3896_v33  ;;  %v4431_v32 = vld [vmem:[#allocation5 + $0x36c] sm:$0xf] }
  0xa9   :  { %2154 = vmatpush.bf16.msra.mxu3 %v4015_v36  ;;  %v3179_v36 = vor.u32 %v4377_v25, %v3176_v26  ;;  %v2963_v41 = vor.u32 %v4323_v28, %v2960_v29  ;;  %v4587_v25 = vld [vmem:[#allocation5 + $0x84c] sm:$0xf]  ;;  %v4016_v26 = vld [vmem:[#allocation5 + $0x860] sm:$0xf0]  ;;  %v4533_v29 = vld [vmem:[#allocation5 + $0x69c] sm:$0xf] }
  0xaa   :  { %2192 = vmatpush.bf16.msra.mxu0 %v3275_v40  ;;  %v4503_v40 = vld [vmem:[#allocation5 + $0x5ac] sm:$0xf]  ;;  %v3392_v33 = vld [vmem:[#allocation5 + $0x380] sm:$0xf0] }
  0xab   :  { %2142 = vmatpush.bf16.msra.mxu1 %v3799_v46  ;;  %v4605_v46 = vld [vmem:[#allocation5 + $0x8dc] sm:$0xf]  ;;  %v3683_v52 = vor.u32 %v4503_v40, %v3680_v42 }
  0xac   :  { %2180 = vmatpush.bf16.msrb.mxu2 %v3059_v43  ;;  %v4371_v43 = vld [vmem:[#allocation5 + $0x18c] sm:$0xf] }
  0xad   :  { %2155 = vmatpush.bf16.msra.mxu3 %v3991_v50  ;;  %4126 = vmatmul.msk.bf16.vlgmr.msrb.gmra.mxu0 %vm1900_vm0, %v4895_v48  ;;  %v4551_v50 = vld [vmem:[#allocation5 + $0x72c] sm:$0xf] }
  0xae   :  { %2193 = vmatpush.bf16.msra.mxu0 %v3251_v53  ;;  %v3155_v53 = vor.u32 %v4371_v43, %v3152_v44  ;;  %v4581_v43 = vld [vmem:[#allocation5 + $0x81c] sm:$0xf]  ;;  %v3992_v44 = vld [vmem:[#allocation5 + $0x830] sm:$0xf0] }
  0xaf   :  { %2143 = vmatpush.bf16.msra.mxu1 %v3775_v61  ;;  %v3875_v61 = vor.u32 %v4551_v50, %v3872_v51 }
  0xb0   :  { %2181 = vmatpush.bf16.msrb.mxu2 %v3035_v58  ;;  %v4091_v58 = vor.u32 %v4605_v46, %v4088_v47  ;;  %v4527_v46 = vld [vmem:[#allocation5 + $0x66c] sm:$0xf]  ;;  %v3776_v47 = vld [vmem:[#allocation5 + $0x680] sm:$0xf0] }
  0xb1   :  { %2156 = vmatpush.bf16.msra.mxu3 %v3967_v0  ;;  %v3467_v0 = vor.u32 %v4449_v54, %v3464_v56  ;;  %v3995_v56 = vor.u32 %v4581_v43, %v3992_v44  ;;  %v3710_v44 = vld [vmem:[#allocation5 + $0x5e0] sm:$0xf] }
  0xb2   :  { %2194 = vmatpush.bf16.msra.mxu0 %v3227_v3  ;;  %v3659_v3 = vor.u32 %v4497_v59, %v3656_v60  ;;  %v3560_v59 = vld [vmem:[#allocation5 + $0x4d0] sm:$0xf0]  ;;  %v3779_v60 = vor.u32 %v4527_v46, %v3776_v47  ;;  %v3302_v46 = vld [vmem:[#allocation5 + $0x2b0] sm:$0xf]  ;;  %v4411_v47 = vld [vmem:[#allocation5 + $0x2c4] sm:$0xf0] }
  0xb3   :  { %2144 = vmatpush.bf16.msra.mxu1 %v3751_v11  ;;  %v3851_v11 = vor.u32 %v4545_v1, %v3848_v2  ;;  %v4521_v1 = vld [vmem:[#allocation5 + $0x63c] sm:$0xf]  ;;  %v3752_v2 = vld [vmem:[#allocation5 + $0x650] sm:$0xf0] }
  0xb4   :  { %2182 = vmatpush.bf16.msrb.mxu2 %v3011_v6  ;;  %v4067_v6 = vor.u32 %v4599_v62, %v4064_v63  ;;  %v3968_v62 = vld [vmem:[#allocation5 + $0x800] sm:$0xf0] }
  0xb5   :  { %2157 = vmatpush.bf16.msra.mxu3 %v3943_v15  ;;  %v4539_v15 = vld [vmem:[#allocation5 + $0x6cc] sm:$0xf] }
  0xb6   :  { %2195 = vmatpush.bf16.msra.mxu0 %v3203_v19  ;;  %v4437_v19 = vld [vmem:[#allocation5 + $0x39c] sm:$0xf]  ;;  %v3827_v24 = vor.u32 %v4539_v15, %v3824_v16  ;;  %v1913_v38 = vpop.f32.mrf.mxu0 }
  0xb7   :  { %2145 = vmatpush.bf16.msra.mxu1 %v3727_v27  ;;  %v394_v27 = vperm.slane %v4922_v17, 0  ;;  %v3419_v28 = vor.u32 %v4437_v19, %v3416_v20  ;;  %v1926_v40 = vpop.f32.mrf.mxu1  ;;  %v4369_v19 = vld [vmem:[#allocation5 + $0x174] sm:$0xf0]  ;;  %v4569_v20 = vld [vmem:[#allocation5 + $0x7bc] sm:$0xf] }
  0xb8   :  { %2183 = vmatpush.bf16.msrb.mxu2 %v2987_v23  ;;  %v3608_v23 = vld [vmem:[#allocation5 + $0x530] sm:$0xf0] }
  0xb9   :  { %2158 = vmatpush.bf16.msra.mxu3 %v3919_v30  ;;  %v3800_v30 = vld [vmem:[#allocation5 + $0x6b0] sm:$0xf0]  ;;  %v1914_v42 = vadd.f32 %v1913_v38, %v394_v27  ;;  %v3539_v27 = vor.u32 %v4467_v7, %v3536_v10  ;;  %v4363_v38 = vld [vmem:[#allocation5 + $0x144] sm:$0xf0] }
  0xba   :  { %2196 = vmatpush.bf16.msra.mxu0 %v3179_v36  ;;  %2146 = vmatmul.bf16.vlgmr.msra.gmra.mxu1 %v4899_v34  ;;  %v4479_v36 = vld [vmem:[#allocation5 + $0x4ec] sm:$0xf]  ;;  %v4351_v7 = vld [vmem:[#allocation5 + $0xe4] sm:$0xf0] }
  0xbb   :  { %2203 = vmatpush.bf16.msrb.mxu1 %v3515_v31  ;;  %v3611_v31 = vor.u32 %v4485_v22, %v3608_v23  ;;  %v3587_v50 = vor.u32 %v4479_v36, %v3584_v37  ;;  %v1927_v51 = vadd.f32 %v1926_v40, %v1914_v42  ;;  %v4515_v23 = vld [vmem:[#allocation5 + $0x60c] sm:$0xf]  ;;  %v3110_v36 = vld [vmem:[#allocation5 + $0x130] sm:$0xf] }
  0xbc   :  { %2184 = vmatpush.bf16.msrb.mxu2 %v2963_v41  ;;  %2159 = vmatmul.bf16.vlgmr.msra.gmra.mxu3 %v4901_v39  ;;  %v3803_v41 = vor.u32 %v4533_v29, %v3800_v30  ;;  %v4417_v29 = vld [vmem:[#allocation5 + $0x2f4] sm:$0xf0]  ;;  %v3518_v30 = vld [vmem:[#allocation5 + $0x460] sm:$0xf]  ;;  %v4563_v40 = vld [vmem:[#allocation5 + $0x78c] sm:$0xf] }
  0xbd   :  { %2216 = vmatpush.bf16.msrb.mxu3 %v3707_v35  ;;  %v4019_v35 = vor.u32 %v4587_v25, %v4016_v26  ;;  %v3326_v25 = vld [vmem:[#allocation5 + $0x2e0] sm:$0xf] }
  0xbe   :  { %2197 = vmatpush.bf16.msra.mxu0 %v3155_v53  ;;  %v3368_v53 = vld [vmem:[#allocation5 + $0x350] sm:$0xf0]  ;;  %v1915_v15 = vpop.f32.mrf.mxu0  ;;  %v3327_v42 = vor.u32 %v4417_v29, %v3326_v25  ;;  %v4495_v29 = vld [vmem:[#allocation5 + $0x564] sm:$0xf0] }
  0xbf   :  { %2204 = vmatpush.bf16.msrb.mxu1 %v3491_v49  ;;  %2185 = vmatmul.bf16.vlgmr.msrb.gmra.mxu2 %v4887_v8  ;;  %v1939_v49 = vpop.f32.mrf.mxu2  ;;  %v1952_v54 = vpop.f32.mrf.mxu3  ;;  %v4399_v15 = vld [vmem:[#allocation5 + $0x264] sm:$0xf0] }
  0xc0   :  { %2229 = vmatpush.bf16.msra.mxu2 %v3899_v45  ;;  %v3395_v45 = vor.u32 %v4431_v32, %v3392_v33  ;;  %v1940_v63 = vadd.f32 %v1939_v49, %v1927_v51  ;;  %v1928_v16 = vpop.f32.mrf.mxu1  ;;  %v3135_v33 = vor.u32 %v4369_v19, %v3134_v12  ;;  %v3494_v49 = vld [vmem:[#allocation5 + $0x430] sm:$0xf]  ;;  %v3111_v51 = vor.u32 %v4363_v38, %v3110_v36  ;;  %v3662_v12 = vld [vmem:[#allocation5 + $0x580] sm:$0xf] }
  0xc1   :  { %2217 = vmatpush.bf16.msrb.mxu3 %v3683_v52  ;;  %2198 = vmatmul.bf16.vlgmr.msra.gmra.mxu0 %v4889_v9  ;;  %v4425_v52 = vld [vmem:[#allocation5 + $0x33c] sm:$0xf]  ;;  %v3446_v16 = vld [vmem:[#allocation5 + $0x3d0] sm:$0xf] }
  0xc2   :  { %2242 = vmatpush.bf16.msrb.mxu0 %v4091_v58  ;;  %v4473_v58 = vld [vmem:[#allocation5 + $0x4bc] sm:$0xf]  ;;  %v4926_v5 = vadd.f32 %v1952_v54, %v1940_v63  ;;  %v3086_v54 = vld [vmem:[#allocation5 + $0x100] sm:$0xf]  ;;  %v4405_v63 = vld [vmem:[#allocation5 + $0x294] sm:$0xf0] }
  0xc3   :  { %2205 = vmatpush.bf16.msrb.mxu1 %v3467_v0  ;;  %v3371_v0 = vor.u32 %v4425_v52, %v3368_v53  ;;  %v3563_v4 = vor.u32 %v4473_v58, %v3560_v59  ;;  %v3303_v58 = vor.u32 %v4411_v47, %v3302_v46  ;;  %v3206_v46 = vld [vmem:[#allocation5 + $0x1f0] sm:$0xf]  ;;  %v395_v47 = vperm.slane %v4922_v17, 1  ;;  %v4483_v17 = vld [vmem:[#allocation5 + $0x504] sm:$0xf0] }
  0xc4   :  { %2230 = vmatpush.bf16.msra.mxu2 %v3875_v61  ;;  %v4575_v61 = vld [vmem:[#allocation5 + $0x7ec] sm:$0xf] }
  0xc5   :  { %2218 = vmatpush.bf16.msrb.mxu3 %v3659_v3  ;;  %v4419_v3 = vld [vmem:[#allocation5 + $0x30c] sm:$0xf] }
  0xc6   :  { %2243 = vmatpush.bf16.msrb.mxu0 %v4067_v6  ;;  %v3344_v6 = vld [vmem:[#allocation5 + $0x320] sm:$0xf0] }
  0xc7   :  { %2206 = vmatpush.bf16.msrb.mxu1 %v3443_v14  ;;  %v4112_v14 = vld [vmem:[#allocation5 + $0x920] sm:$0xf0]  ;;  %v3347_v22 = vor.u32 %v4419_v3, %v3344_v6  ;;  %v1941_v26 = vpop.f32.mrf.mxu2  ;;  %v1954_v32 = vpop.f32.mrf.mxu3  ;;  %v3062_v6 = vld [vmem:[#allocation5 + $0xd0] sm:$0xf] }
  0xc8   :  { %2231 = vmatpush.bf16.msra.mxu2 %v3851_v11  ;;  %v3971_v11 = vor.u32 %v4575_v61, %v3968_v62  ;;  %v4507_v61 = vld [vmem:[#allocation5 + $0x5c4] sm:$0xf0]  ;;  %v3278_v62 = vld [vmem:[#allocation5 + $0x280] sm:$0xf]  ;;  %v3063_v19 = vor.u32 %v4351_v7, %v3062_v6 }
  0xc9   :  { %2219 = vmatpush.bf16.msrb.mxu3 %v3635_v18  ;;  %v3755_v18 = vor.u32 %v4521_v1, %v3752_v2  ;;  %v4453_v1 = vld [vmem:[#allocation5 + $0x414] sm:$0xf0]  ;;  %v3279_v10 = vor.u32 %v4405_v63, %v3278_v62  ;;  %v3422_v32 = vld [vmem:[#allocation5 + $0x3a0] sm:$0xf]  ;;  %v3590_v62 = vld [vmem:[#allocation5 + $0x4f0] sm:$0xf] }
  0xca   :  { %2244 = vmatpush.bf16.msrb.mxu0 %v4043_v21  ;;  %v3944_v21 = vld [vmem:[#allocation5 + $0x7d0] sm:$0xf0]  ;;  %v3182_v63 = vld [vmem:[#allocation5 + $0x1c0] sm:$0xf] }
  0xcb   :  { %2207 = vmatpush.bf16.msrb.mxu1 %v3419_v28  ;;  %v4115_v28 = vor.u32 %v4611_v13, %v4112_v14  ;;  %v4501_v13 = vld [vmem:[#allocation5 + $0x594] sm:$0xf0]  ;;  %v3254_v14 = vld [vmem:[#allocation5 + $0x250] sm:$0xf] }
  0xcc   :  { %2232 = vmatpush.bf16.msra.mxu2 %v3827_v24  ;;  %v3728_v24 = vld [vmem:[#allocation5 + $0x620] sm:$0xf0]  ;;  %v3255_v26 = vor.u32 %v4399_v15, %v3254_v14  ;;  %v3902_v14 = vld [vmem:[#allocation5 + $0x760] sm:$0xf]  ;;  %v4561_v15 = vld [vmem:[#allocation5 + $0x774] sm:$0xf0] }
  0xcd   :  { %2220 = vmatpush.bf16.msrb.mxu3 %v3611_v31  ;;  %v4465_v31 = vld [vmem:[#allocation5 + $0x474] sm:$0xf0]  ;;  %v3731_v37 = vor.u32 %v4515_v23, %v3728_v24 }
  0xce   :  { %2245 = vmatpush.bf16.msrb.mxu0 %v4019_v35  ;;  %v3947_v35 = vor.u32 %v4569_v20, %v3944_v21  ;;  %v3519_v43 = vor.u32 %v4465_v31, %v3518_v30  ;;  %v3663_v21 = vor.u32 %v4501_v13, %v3662_v12  ;;  %v4345_v23 = vld [vmem:[#allocation5 + $0xb4] sm:$0xf0]  ;;  %v3230_v30 = vld [vmem:[#allocation5 + $0x220] sm:$0xf]  ;;  %v3591_v13 = vor.u32 %v4483_v17, %v3590_v62  ;;  %v4408_v62 = vld [vmem:[#allocation5 + $0x2b4] sm:$0xf] }
  0xcf   :  { %2208 = vmatpush.bf16.msrb.mxu1 %v3395_v45  ;;  %v4513_v45 = vld [vmem:[#allocation5 + $0x5f4] sm:$0xf0]  ;;  %v1991_v2 = vpop.f32.mrf.mxu2  ;;  %v3304_v17 = vld [vmem:[#allocation5 + $0x2c8] sm:$0xf0] }
  0xd0   :  { %2233 = vmatpush.bf16.msra.mxu2 %v3803_v41  ;;  %v3920_v41 = vld [vmem:[#allocation5 + $0x7a0] sm:$0xf0]  ;;  %v3711_v53 = vor.u32 %v4513_v45, %v3710_v44  ;;  %v4393_v31 = vld [vmem:[#allocation5 + $0x234] sm:$0xf0] }
  0xd1   :  { %2221 = vmatpush.bf16.msrb.mxu3 %v3587_v50  ;;  %v4459_v50 = vld [vmem:[#allocation5 + $0x444] sm:$0xf0]  ;;  %v3923_v52 = vor.u32 %v4563_v40, %v3920_v41  ;;  %v3014_v40 = vld [vmem:[#allocation5 + $0x70] sm:$0xf]  ;;  %v4489_v45 = vld [vmem:[#allocation5 + $0x534] sm:$0xf0] }
  0xd2   :  { %2246 = vmatpush.bf16.msrb.mxu0 %v3995_v56  ;;  %v4357_v56 = vld [vmem:[#allocation5 + $0x114] sm:$0xf0]  ;;  %v3495_v59 = vor.u32 %v4459_v50, %v3494_v49  ;;  %v4339_v41 = vld [vmem:[#allocation5 + $0x84] sm:$0xf0]  ;;  %v3398_v50 = vld [vmem:[#allocation5 + $0x370] sm:$0xf] }
  0xd3   :  { %2209 = vmatpush.bf16.msrb.mxu1 %v3371_v0  ;;  %v3470_v0 = vld [vmem:[#allocation5 + $0x400] sm:$0xf]  ;;  %v3087_v3 = vor.u32 %v4357_v56, %v3086_v54  ;;  %v4387_v49 = vld [vmem:[#allocation5 + $0x204] sm:$0xf0]  ;;  %v4333_v56 = vld [vmem:[#allocation5 + $0x54] sm:$0xf0] }
  0xd4   :  { %2234 = vmatpush.bf16.msra.mxu2 %v3779_v60  ;;  %v3686_v60 = vld [vmem:[#allocation5 + $0x5b0] sm:$0xf]  ;;  %v2990_v54 = vld [vmem:[#allocation5 + $0x40] sm:$0xf] }
  0xd5   :  { %2222 = vmatpush.bf16.msrb.mxu3 %v3563_v4  ;;  %v3687_v4 = vor.u32 %v4507_v61, %v3686_v60  ;;  %v3207_v60 = vor.u32 %v4387_v49, %v3206_v46  ;;  %v2991_v7 = vor.u32 %v4333_v56, %v2990_v54  ;;  %v4070_v49 = vld [vmem:[#allocation5 + $0x8b0] sm:$0xf]  ;;  %v3854_v54 = vld [vmem:[#allocation5 + $0x700] sm:$0xf]  ;;  %v4549_v56 = vld [vmem:[#allocation5 + $0x714] sm:$0xf0] }
  0xd6   :  { %2247 = vmatpush.bf16.msrb.mxu0 %v3971_v11  ;;  %v3471_v11 = vor.u32 %v4453_v1, %v3470_v0  ;;  %v1965_v20 = vpop.f32.mrf.mxu0 }
  0xd7   :  { %2210 = vmatpush.bf16.msrb.mxu1 %v3347_v22  ;;  %v3038_v22 = vld [vmem:[#allocation5 + $0xa0] sm:$0xf]  ;;  %v1966_v24 = vadd.f32 %v1965_v20, %v4926_v5  ;;  %v1978_v25 = vpop.f32.mrf.mxu1  ;;  %v4477_v20 = vld [vmem:[#allocation5 + $0x4d4] sm:$0xf0] }
  0xd8   :  { %2235 = vmatpush.bf16.msra.mxu2 %v3755_v18  ;;  %v4447_v18 = vld [vmem:[#allocation5 + $0x3e4] sm:$0xf0]  ;;  %v3614_v5 = vld [vmem:[#allocation5 + $0x520] sm:$0xf] }
  0xd9   :  { %2223 = vmatpush.bf16.msrb.mxu3 %v3539_v27  ;;  %v3447_v27 = vor.u32 %v4447_v18, %v3446_v16  ;;  %v1979_v36 = vadd.f32 %v1978_v25, %v1966_v24  ;;  %v3566_v16 = vld [vmem:[#allocation5 + $0x4c0] sm:$0xf]  ;;  %v4423_v24 = vld [vmem:[#allocation5 + $0x324] sm:$0xf0] }
  0xda   :  { %2248 = vmatpush.bf16.msrb.mxu0 %v3947_v35  ;;  %2211 = vmatmul.bf16.vlgmr.msrb.gmra.mxu1 %v4883_v55  ;;  %v1993_v35 = vpop.f32.mrf.mxu2  ;;  %v4094_v25 = vld [vmem:[#allocation5 + $0x8e0] sm:$0xf] }
  0xdb   :  { %2262 = vmatpush.bf16.msra.mxu1 %v4115_v28  ;;  %v3638_v28 = vld [vmem:[#allocation5 + $0x550] sm:$0xf] }
  0xdc   :  { %2236 = vmatpush.bf16.msra.mxu2 %v3731_v37  ;;  %2224 = vmatmul.bf16.vlgmr.msrb.gmra.mxu3 %v4885_v57  ;;  %v3039_v37 = vor.u32 %v4345_v23, %v3038_v22  ;;  %v3639_v38 = vor.u32 %v4495_v29, %v3638_v28  ;;  %v4375_v22 = vld [vmem:[#allocation5 + $0x1a4] sm:$0xf0]  ;;  %v3350_v23 = vld [vmem:[#allocation5 + $0x310] sm:$0xf] }
  0xdd   :  { %2268 = vmatpush.bf16.msra.mxu3 %v3135_v33  ;;  %v4441_v33 = vld [vmem:[#allocation5 + $0x3b4] sm:$0xf0]  ;;  %v4118_v28 = vld [vmem:[#allocation5 + $0x910] sm:$0xf]  ;;  %v4615_v29 = vld [vmem:[#allocation5 + $0x924] sm:$0xf0] }
  0xde   :  { %2249 = vmatpush.bf16.msrb.mxu0 %v3923_v52  ;;  %v3423_v44 = vor.u32 %v4441_v33, %v3422_v32  ;;  %v3015_v52 = vor.u32 %v4339_v41, %v3014_v40  ;;  %v3878_v32 = vld [vmem:[#allocation5 + $0x730] sm:$0xf]  ;;  %v4471_v40 = vld [vmem:[#allocation5 + $0x4a4] sm:$0xf0] }
  0xdf   :  { %2281 = vmatpush.bf16.msrb.mxu1 %v3327_v42  ;;  %2237 = vmatmul.bf16.vlgmr.msra.gmra.mxu2 %v4899_v34  ;;  %v4933_v42 = vadd.f32 %v1991_v2, %v1979_v36  ;;  %v1980_v1 = vpop.f32.mrf.mxu1  ;;  %v4381_v2 = vld [vmem:[#allocation5 + $0x1d4] sm:$0xf0]  ;;  %v3351_v36 = vor.u32 %v4423_v24, %v3350_v23 }
  0xe0   :  { %2294 = vmatpush.bf16.msrb.mxu2 %v3519_v43  ;;  %v3231_v43 = vor.u32 %v4393_v31, %v3230_v30  ;;  %v3183_v18 = vor.u32 %v4381_v2, %v3182_v63  ;;  %v3903_v30 = vor.u32 %v4561_v15, %v3902_v14  ;;  %v3567_v31 = vor.u32 %v4477_v20, %v3566_v16  ;;  %v4046_v63 = vld [vmem:[#allocation5 + $0x880] sm:$0xf]  ;;  %v3280_v14 = vld [vmem:[#allocation5 + $0x298] sm:$0xf0]  ;;  %v4022_v15 = vld [vmem:[#allocation5 + $0x850] sm:$0xf] }
  0xe1   :  { %2269 = vmatpush.bf16.msra.mxu3 %v3111_v51  ;;  %2250 = vmatmul.bf16.vlgmr.msrb.gmra.mxu0 %v4901_v39  ;;  %v4435_v51 = vld [vmem:[#allocation5 + $0x384] sm:$0xf0]  ;;  %v3855_v1 = vor.u32 %v4549_v56, %v3854_v54  ;;  %v3806_v20 = vld [vmem:[#allocation5 + $0x6a0] sm:$0xf] }
  0xe2   :  { %2307 = vmatpush.bf16.msra.mxu0 %v3711_v53  ;;  %v3615_v53 = vor.u32 %v4489_v45, %v3614_v5  ;;  %v3399_v61 = vor.u32 %v4435_v51, %v3398_v50  ;;  %v2017_v6 = vpop.f32.mrf.mxu2  ;;  %v4119_v5 = vor.u32 %v4615_v29, %v4118_v28  ;;  %v4414_v45 = vld [vmem:[#allocation5 + $0x2e4] sm:$0xf]  ;;  %v4603_v50 = vld [vmem:[#allocation5 + $0x8c4] sm:$0xf0]  ;;  %v3256_v29 = vld [vmem:[#allocation5 + $0x268] sm:$0xf0] }
  0xe3   :  { %2282 = vmatpush.bf16.msrb.mxu1 %v3303_v58  ;;  %v1967_v58 = vpop.f32.mrf.mxu0  ;;  %v4591_v16 = vld [vmem:[#allocation5 + $0x864] sm:$0xf0] }
  0xe4   :  { %2295 = vmatpush.bf16.msrb.mxu2 %v3495_v59  ;;  %v2004_v59 = vpop.f32.mrf.mxu3  ;;  %v4023_v24 = vor.u32 %v4591_v16, %v4022_v15  ;;  %v2992_v15 = vld [vmem:[#allocation5 + $0x58] sm:$0xf0]  ;;  %v4378_v16 = vld [vmem:[#allocation5 + $0x1c4] sm:$0xf] }
  0xe5   :  { %2270 = vmatpush.bf16.msra.mxu3 %v3087_v3  ;;  %v2005_v0 = vadd.f32 %v2004_v59, %v395_v47  ;;  %v3374_v3 = vld [vmem:[#allocation5 + $0x340] sm:$0xf]  ;;  %v3328_v47 = vld [vmem:[#allocation5 + $0x2f8] sm:$0xf0]  ;;  %v4071_v59 = vor.u32 %v4603_v50, %v4070_v49 }
  0xe6   :  { %2308 = vmatpush.bf16.msra.mxu0 %v3687_v4  ;;  %v4429_v4 = vld [vmem:[#allocation5 + $0x354] sm:$0xf0]  ;;  %v3331_v58 = vor.u32 %v4414_v45, %v3328_v47  ;;  %v3232_v45 = vld [vmem:[#allocation5 + $0x238] sm:$0xf0]  ;;  %v3758_v50 = vld [vmem:[#allocation5 + $0x640] sm:$0xf] }
  0xe7   :  { %2283 = vmatpush.bf16.msrb.mxu1 %v3279_v10  ;;  %v2966_v10 = vld [vmem:[#allocation5 + $0x10] sm:$0xf]  ;;  %v4938_v12 = vadd.f32 %v2017_v6, %v2005_v0  ;;  %v4597_v0 = vld [vmem:[#allocation5 + $0x894] sm:$0xf0]  ;;  %v3307_v6 = vor.u32 %v4408_v62, %v3304_v17  ;;  %v3208_v17 = vld [vmem:[#allocation5 + $0x208] sm:$0xf0] }
  0xe8   :  { %2296 = vmatpush.bf16.msrb.mxu2 %v3471_v11  ;;  %v4327_v11 = vld [vmem:[#allocation5 + $0x24] sm:$0xf0] }
  0xe9   :  { %2271 = vmatpush.bf16.msra.mxu3 %v3063_v19  ;;  %v3375_v19 = vor.u32 %v4429_v4, %v3374_v3  ;;  %v3830_v3 = vld [vmem:[#allocation5 + $0x6d0] sm:$0xf]  ;;  %v4543_v4 = vld [vmem:[#allocation5 + $0x6e4] sm:$0xf0] }
  0xea   :  { %2309 = vmatpush.bf16.msra.mxu0 %v3663_v21  ;;  %4127 = vmatmul.msk.bf16.vlgmr.msra.gmra.mxu1 %vm1900_vm0, %v4895_v48  ;;  %v3158_v21 = vld [vmem:[#allocation5 + $0x190] sm:$0xf]  ;;  %v2019_v46 = vpop.f32.mrf.mxu2 }
  0xeb   :  { %2284 = vmatpush.bf16.msrb.mxu1 %v3255_v26  ;;  %v2967_v26 = vor.u32 %v4327_v11, %v2966_v10  ;;  %v3159_v35 = vor.u32 %v4375_v22, %v3158_v21  ;;  %v4354_v10 = vld [vmem:[#allocation5 + $0x104] sm:$0xf]  ;;  %v3088_v11 = vld [vmem:[#allocation5 + $0x118] sm:$0xf0]  ;;  %v4537_v21 = vld [vmem:[#allocation5 + $0x6b4] sm:$0xf0] }
  0xec   :  { %2297 = vmatpush.bf16.msrb.mxu2 %v3447_v27  ;;  %v4609_v27 = vld [vmem:[#allocation5 + $0x8f4] sm:$0xf0]  ;;  %v2006_v33 = vpop.f32.mrf.mxu3  ;;  %v4579_v46 = vld [vmem:[#allocation5 + $0x804] sm:$0xf0] }
  0xed   :  { %2272 = vmatpush.bf16.msra.mxu3 %v3039_v37  ;;  %v4555_v37 = vld [vmem:[#allocation5 + $0x744] sm:$0xf0]  ;;  %v4095_v41 = vor.u32 %v4609_v27, %v4094_v25  ;;  %v4348_v25 = vld [vmem:[#allocation5 + $0xd4] sm:$0xf] }
  0xee   :  { %2310 = vmatpush.bf16.msra.mxu0 %v3639_v38  ;;  %v3542_v38 = vld [vmem:[#allocation5 + $0x490] sm:$0xf]  ;;  %v3879_v51 = vor.u32 %v4555_v37, %v3878_v32  ;;  %v4396_v27 = vld [vmem:[#allocation5 + $0x254] sm:$0xf]  ;;  %v3807_v32 = vor.u32 %v4537_v21, %v3806_v20  ;;  %v4567_v21 = vld [vmem:[#allocation5 + $0x7a4] sm:$0xf0] }
  0xef   :  { %2285 = vmatpush.bf16.msrb.mxu1 %v3231_v43  ;;  %v4366_v43 = vld [vmem:[#allocation5 + $0x164] sm:$0xf]  ;;  %v3259_v37 = vor.u32 %v4396_v27, %v3256_v29  ;;  %v3926_v20 = vld [vmem:[#allocation5 + $0x790] sm:$0xf]  ;;  %v4456_v27 = vld [vmem:[#allocation5 + $0x434] sm:$0xf] }
  0xf0   :  { %2298 = vmatpush.bf16.msrb.mxu2 %v3423_v44  ;;  %v3136_v44 = vld [vmem:[#allocation5 + $0x178] sm:$0xf0]  ;;  %v4324_v29 = vld [vmem:[#allocation5 + $0x14] sm:$0xf] }
  0xf1   :  { %2273 = vmatpush.bf16.msra.mxu3 %v3015_v52  ;;  %v3543_v52 = vor.u32 %v4471_v40, %v3542_v38 }
  0xf2   :  { %2311 = vmatpush.bf16.msra.mxu0 %v3615_v53  ;;  %v3139_v53 = vor.u32 %v4366_v43, %v3136_v44  ;;  %v4390_v43 = vld [vmem:[#allocation5 + $0x224] sm:$0xf] }
  0xf3   :  { %2286 = vmatpush.bf16.msrb.mxu1 %v3207_v60  ;;  %v4360_v60 = vld [vmem:[#allocation5 + $0x134] sm:$0xf] }
  0xf4   :  { %2299 = vmatpush.bf16.msrb.mxu2 %v3399_v61  ;;  %v3112_v61 = vld [vmem:[#allocation5 + $0x148] sm:$0xf0] }
  0xf5   :  { %2274 = vmatpush.bf16.msra.mxu3 %v2991_v7  ;;  %v3115_v2 = vor.u32 %v4360_v60, %v3112_v61  ;;  %v4047_v7 = vor.u32 %v4597_v0, %v4046_v63  ;;  %v4384_v60 = vld [vmem:[#allocation5 + $0x1f4] sm:$0xf]  ;;  %v3950_v63 = vld [vmem:[#allocation5 + $0x7c0] sm:$0xf]  ;;  %v4573_v0 = vld [vmem:[#allocation5 + $0x7d4] sm:$0xf0] }
  0xf6   :  { %2312 = vmatpush.bf16.msra.mxu0 %v3591_v13  ;;  %v4402_v13 = vld [vmem:[#allocation5 + $0x284] sm:$0xf]  ;;  %v2030_v22 = vpop.f32.mrf.mxu0 }
  0xf7   :  { %2287 = vmatpush.bf16.msrb.mxu1 %v3183_v18  ;;  %v3831_v18 = vor.u32 %v4543_v4, %v3830_v3  ;;  %v3283_v23 = vor.u32 %v4402_v13, %v3280_v14  ;;  %v2031_v28 = vadd.f32 %v2030_v22, %v4938_v12  ;;  %v2043_v40 = vpop.f32.mrf.mxu1  ;;  %v3974_v12 = vld [vmem:[#allocation5 + $0x7f0] sm:$0xf]  ;;  %v3951_v13 = vor.u32 %v4573_v0, %v3950_v63  ;;  %v4330_v14 = vld [vmem:[#allocation5 + $0x44] sm:$0xf] }
  0xf8   :  { %2300 = vmatpush.bf16.msrb.mxu2 %v3375_v19  ;;  %v3091_v19 = vor.u32 %v4354_v10, %v3088_v11  ;;  %v3975_v56 = vor.u32 %v4579_v46, %v3974_v12  ;;  %v3520_v10 = vld [vmem:[#allocation5 + $0x478] sm:$0xf0]  ;;  %v3211_v11 = vor.u32 %v4384_v60, %v3208_v17  ;;  %v3688_v12 = vld [vmem:[#allocation5 + $0x5c8] sm:$0xf0] }
  0xf9   :  { %2275 = vmatpush.bf16.msra.mxu3 %v2967_v26  ;;  %v3064_v26 = vld [vmem:[#allocation5 + $0xe8] sm:$0xf0]  ;;  %v2044_v44 = vadd.f32 %v2043_v40, %v2031_v28  ;;  %v4558_v40 = vld [vmem:[#allocation5 + $0x764] sm:$0xf] }
  0xfa   :  { %2313 = vmatpush.bf16.msra.mxu0 %v3567_v31  ;;  %v4585_v31 = vld [vmem:[#allocation5 + $0x834] sm:$0xf0]  ;;  %v3067_v33 = vor.u32 %v4348_v25, %v3064_v26  ;;  %v2995_v26 = vor.u32 %v4330_v14, %v2992_v15  ;;  %v3496_v28 = vld [vmem:[#allocation5 + $0x448] sm:$0xf0]  ;;  %v4492_v14 = vld [vmem:[#allocation5 + $0x554] sm:$0xf] }
  0xfb   :  { %2288 = vmatpush.bf16.msrb.mxu1 %v3159_v35  ;;  %v3782_v35 = vld [vmem:[#allocation5 + $0x670] sm:$0xf]  ;;  %v3499_v46 = vor.u32 %v4456_v27, %v3496_v28  ;;  %v4072_v60 = vld [vmem:[#allocation5 + $0x8c8] sm:$0xf0]  ;;  %v4486_v27 = vld [vmem:[#allocation5 + $0x524] sm:$0xf] }
  0xfc   :  { %2301 = vmatpush.bf16.msrb.mxu2 %v3351_v36  ;;  %2276 = vmatmul.bf16.vlgmr.msra.gmra.mxu3 %v4887_v8  ;;  %v4531_v36 = vld [vmem:[#allocation5 + $0x684] sm:$0xf0]  ;;  %v3640_v15 = vld [vmem:[#allocation5 + $0x568] sm:$0xf0]  ;;  %v3616_v28 = vld [vmem:[#allocation5 + $0x538] sm:$0xf0] }
  0xfd   :  { %2320 = vmatpush.bf16.msrb.mxu3 %v3903_v30  ;;  %v3998_v30 = vld [vmem:[#allocation5 + $0x820] sm:$0xf]  ;;  %v3783_v47 = vor.u32 %v4531_v36, %v3782_v35  ;;  %v4372_v35 = vld [vmem:[#allocation5 + $0x194] sm:$0xf]  ;;  %v3160_v36 = vld [vmem:[#allocation5 + $0x1a8] sm:$0xf0] }
  0xfe   :  { %2314 = vmatpush.bf16.msra.mxu0 %v3543_v52  ;;  %2289 = vmatmul.bf16.vlgmr.msrb.gmra.mxu1 %v4889_v9  ;;  %v3999_v38 = vor.u32 %v4585_v31, %v3998_v30  ;;  %v2032_v52 = vpop.f32.mrf.mxu0 }
  0xff   :  { %2333 = vmatpush.bf16.msra.mxu1 %v4095_v41  ;;  %2302 = vmatmul.bf16.vlgmr.msrb.gmra.mxu2 %v4883_v55  ;;  %v4342_v41 = vld [vmem:[#allocation5 + $0xa4] sm:$0xf]  ;;  %v2056_v54 = vpop.f32.mrf.mxu3  ;;  %v3472_v52 = vld [vmem:[#allocation5 + $0x418] sm:$0xf0] }
 0x100   :  { %2353 = vmatpush.bf16.msra.mxu2 %v4119_v5  ;;  %v3040_v5 = vld [vmem:[#allocation5 + $0xb8] sm:$0xf0]  ;;  %v2057_v61 = vadd.f32 %v2056_v54, %v2044_v44 }
 0x101   :  { %2321 = vmatpush.bf16.msrb.mxu3 %v3879_v51  ;;  %2315 = vmatmul.bf16.vlgmr.msra.gmra.mxu0 %v4885_v57  ;;  %v3043_v49 = vor.u32 %v4342_v41, %v3040_v5  ;;  %v4525_v51 = vld [vmem:[#allocation5 + $0x654] sm:$0xf0]  ;;  %v3904_v41 = vld [vmem:[#allocation5 + $0x778] sm:$0xf0]  ;;  %v4606_v5 = vld [vmem:[#allocation5 + $0x8e4] sm:$0xf] }
 0x102   :  { %2359 = vmatpush.bf16.msrb.mxu0 %v3139_v53  ;;  %v3235_v53 = vor.u32 %v4390_v43, %v3232_v45  ;;  %v2069_v62 = vpop.f32.mrf.mxu2  ;;  %v4096_v44 = vld [vmem:[#allocation5 + $0x8f8] sm:$0xf0]  ;;  %v4504_v45 = vld [vmem:[#allocation5 + $0x5b4] sm:$0xf] }
 0x103   :  { %2334 = vmatpush.bf16.msra.mxu1 %v4071_v59  ;;  %v3016_v59 = vld [vmem:[#allocation5 + $0x88] sm:$0xf0]  ;;  %v4945_v3 = vadd.f32 %v2069_v62, %v2057_v61  ;;  %v3691_v54 = vor.u32 %v4504_v45, %v3688_v12  ;;  %v4498_v61 = vld [vmem:[#allocation5 + $0x584] sm:$0xf]  ;;  %v3664_v62 = vld [vmem:[#allocation5 + $0x598] sm:$0xf0] }
 0x104   :  { %2372 = vmatpush.bf16.msrb.mxu2 %v3331_v58  ;;  %v4336_v58 = vld [vmem:[#allocation5 + $0x74] sm:$0xf]  ;;  %v4426_v12 = vld [vmem:[#allocation5 + $0x344] sm:$0xf] }
 0x105   :  { %2322 = vmatpush.bf16.msrb.mxu3 %v3855_v1  ;;  %v3759_v1 = vor.u32 %v4525_v51, %v3758_v50  ;;  %v3019_v4 = vor.u32 %v4336_v58, %v3016_v59  ;;  %v3907_v50 = vor.u32 %v4558_v40, %v3904_v41  ;;  %v4450_v51 = vld [vmem:[#allocation5 + $0x404] sm:$0xf]  ;;  %v3880_v58 = vld [vmem:[#allocation5 + $0x748] sm:$0xf0]  ;;  %v4600_v59 = vld [vmem:[#allocation5 + $0x8b4] sm:$0xf] }
 0x106   :  { %2360 = vmatpush.bf16.msrb.mxu0 %v3115_v2  ;;  %v3734_v2 = vld [vmem:[#allocation5 + $0x610] sm:$0xf]  ;;  %v4949_v30 = vpop.f32.mrf.mxu0  ;;  %v3475_v17 = vor.u32 %v4450_v51, %v3472_v52  ;;  %v4000_v41 = vld [vmem:[#allocation5 + $0x838] sm:$0xf0]  ;;  %v4528_v51 = vld [vmem:[#allocation5 + $0x674] sm:$0xf] }
 0x107   :  { %2335 = vmatpush.bf16.msra.mxu1 %v4047_v7  ;;  %v4462_v7 = vld [vmem:[#allocation5 + $0x464] sm:$0xf]  ;;  %v3784_v52 = vld [vmem:[#allocation5 + $0x688] sm:$0xf0] }
 0x108   :  { %2373 = vmatpush.bf16.msrb.mxu2 %v3307_v6  ;;  %v4519_v6 = vld [vmem:[#allocation5 + $0x624] sm:$0xf0]  ;;  %v3523_v25 = vor.u32 %v4462_v7, %v3520_v10  ;;  %v4546_v7 = vld [vmem:[#allocation5 + $0x704] sm:$0xf]  ;;  %v3856_v10 = vld [vmem:[#allocation5 + $0x718] sm:$0xf0] }
 0x109   :  { %2323 = vmatpush.bf16.msrb.mxu3 %v3831_v18  ;;  %v2045_v18 = vpop.f32.mrf.mxu1  ;;  %v3735_v22 = vor.u32 %v4519_v6, %v3734_v2  ;;  %v3448_v2 = vld [vmem:[#allocation5 + $0x3e8] sm:$0xf0]  ;;  %v3667_v6 = vor.u32 %v4498_v61, %v3664_v62  ;;  %v3787_v61 = vor.u32 %v4528_v51, %v3784_v52  ;;  %v4628_v51 = vld [vmem:[#allocation8 + $0x60] sm:$0xff] }
 0x10a   :  { %2361 = vmatpush.bf16.msrb.mxu0 %v3091_v19  ;;  %v3184_v19 = vld [vmem:[#allocation5 + $0x1d8] sm:$0xf0]  ;;  %v2071_v43 = vpop.f32.mrf.mxu2  ;;  %v3859_v18 = vor.u32 %v4546_v7, %v3856_v10  ;;  %v4612_v7 = vld [vmem:[#allocation5 + $0x914] sm:$0xf]  ;;  %v4120_v10 = vld [vmem:[#allocation5 + $0x928] sm:$0xf0] }
 0x10b   :  { %2336 = vmatpush.bf16.msra.mxu1 %v4023_v24  ;;  %v3712_v24 = vld [vmem:[#allocation5 + $0x5f8] sm:$0xf0]  ;;  %v3187_v31 = vor.u32 %v4378_v16, %v3184_v19  ;;  %v4438_v19 = vld [vmem:[#allocation5 + $0x3a4] sm:$0xf]  ;;  %v3592_v43 = vld [vmem:[#allocation5 + $0x508] sm:$0xf0] }
 0x10c   :  { %2374 = vmatpush.bf16.msrb.mxu2 %v3283_v23  ;;  %v4510_v23 = vld [vmem:[#allocation5 + $0x5e4] sm:$0xf]  ;;  %v4636_v52 = vld [vmem:[#allocation8 + $0xa0] sm:$0xff] }
 0x10d   :  { %2324 = vmatpush.bf16.msrb.mxu3 %v3807_v32  ;;  %v3927_v32 = vor.u32 %v4567_v21, %v3926_v20  ;;  %v3424_v20 = vld [vmem:[#allocation5 + $0x3b8] sm:$0xf0] }
 0x10e   :  { %2362 = vmatpush.bf16.msrb.mxu0 %v3067_v33  ;;  %v2968_v33 = vld [vmem:[#allocation5 + $0x28] sm:$0xf0]  ;;  %v2084_v0 = vpop.f32.mrf.mxu0 }
 0x10f   :  { %2337 = vmatpush.bf16.msra.mxu1 %v3999_v38  ;;  %4128 = vmatmul.msk.bf16.vlgmr.msra.gmra.mxu2 %vm1900_vm0, %v4895_v48  ;;  %v3715_v38 = vor.u32 %v4510_v23, %v3712_v24  ;;  %v4540_v23 = vld [vmem:[#allocation5 + $0x6d4] sm:$0xf]  ;;  %v3832_v24 = vld [vmem:[#allocation5 + $0x6e8] sm:$0xf0]  ;;  %v3760_v0 = vld [vmem:[#allocation5 + $0x658] sm:$0xf0] }
 0x110   :  { %2375 = vmatpush.bf16.msrb.mxu2 %v3259_v37  ;;  %v2058_v37 = vpop.f32.mrf.mxu3 }
 0x111   :  { %2325 = vmatpush.bf16.msrb.mxu3 %v3783_v47  ;;  %v2971_v47 = vor.u32 %v4324_v29, %v2968_v33  ;;  %v3835_v29 = vor.u32 %v4540_v23, %v3832_v24  ;;  %v3808_v37 = vld [vmem:[#allocation5 + $0x6b8] sm:$0xf0]  ;;  %v3736_v23 = vld [vmem:[#allocation5 + $0x628] sm:$0xf0] }
 0x112   :  { %2363 = vmatpush.bf16.msrb.mxu0 %v3043_v49  ;;  %v3163_v49 = vor.u32 %v4372_v35, %v3160_v36  ;;  %v3619_v35 = vor.u32 %v4486_v27, %v3616_v28  ;;  %v4534_v36 = vld [vmem:[#allocation5 + $0x6a4] sm:$0xf]  ;;  %v3928_v27 = vld [vmem:[#allocation5 + $0x7a8] sm:$0xf0] }
 0x113   :  { %2338 = vmatpush.bf16.msra.mxu1 %v3975_v56  ;;  %v4552_v56 = vld [vmem:[#allocation5 + $0x734] sm:$0xf]  ;;  %v3811_v45 = vor.u32 %v4534_v36, %v3808_v37  ;;  %v4622_v37 = vld [vmem:[#allocation8 + $0x30] sm:$0xff] }
 0x114   :  { %2376 = vmatpush.bf16.msrb.mxu2 %v3235_v53  ;;  %v4099_v53 = vor.u32 %v4606_v5, %v4096_v44  ;;  %v3883_v63 = vor.u32 %v4552_v56, %v3880_v58  ;;  %v4480_v5 = vld [vmem:[#allocation5 + $0x4f4] sm:$0xf]  ;;  %v4474_v56 = vld [vmem:[#allocation5 + $0x4c4] sm:$0xf]  ;;  %v3568_v58 = vld [vmem:[#allocation5 + $0x4d8] sm:$0xf0] }
 0x115   :  { %2326 = vmatpush.bf16.msrb.mxu3 %v3759_v1  ;;  %v4444_v1 = vld [vmem:[#allocation5 + $0x3d4] sm:$0xf] }
 0x116   :  { %2364 = vmatpush.bf16.msrb.mxu0 %v3019_v4  ;;  %v4075_v4 = vor.u32 %v4600_v59, %v4072_v60  ;;  %v3451_v16 = vor.u32 %v4444_v1, %v3448_v2  ;;  %v4420_v60 = vld [vmem:[#allocation5 + $0x314] sm:$0xf]  ;;  %v3571_v2 = vor.u32 %v4474_v56, %v3568_v58 }
 0x117   :  { %2339 = vmatpush.bf16.msra.mxu1 %v3951_v13  ;;  %v4048_v13 = vld [vmem:[#allocation5 + $0x898] sm:$0xf0]  ;;  %v4957_v40 = vpop.f32.mrf.mxu1  ;;  %v4631_v28 = vld [vmem:[#allocation8 + $0x78] sm:$0xff] }
 0x118   :  { %2377 = vmatpush.bf16.msrb.mxu2 %v3211_v11  ;;  %v4594_v11 = vld [vmem:[#allocation5 + $0x884] sm:$0xf] }
 0x119   :  { %2327 = vmatpush.bf16.msrb.mxu3 %v3735_v22  ;;  %v4051_v21 = vor.u32 %v4594_v11, %v4048_v13  ;;  %v3643_v22 = vor.u32 %v4492_v14, %v3640_v15  ;;  %v3952_v13 = vld [vmem:[#allocation5 + $0x7d8] sm:$0xf0]  ;;  %v4468_v14 = vld [vmem:[#allocation5 + $0x494] sm:$0xf]  ;;  %v3544_v15 = vld [vmem:[#allocation5 + $0x4a8] sm:$0xf0] }
 0x11a   :  { %2365 = vmatpush.bf16.msrb.mxu0 %v2995_v26  ;;  %v4024_v26 = vld [vmem:[#allocation5 + $0x868] sm:$0xf0] }
 0x11b   :  { %2340 = vmatpush.bf16.msra.mxu1 %v3927_v32  ;;  %v3400_v32 = vld [vmem:[#allocation5 + $0x388] sm:$0xf0] }
 0x11c   :  { %2378 = vmatpush.bf16.msrb.mxu2 %v3187_v31  ;;  %2328 = vmatmul.bf16.vlgmr.msrb.gmra.mxu3 %v4899_v34  ;;  %v4955_v31 = vpop.f32.mrf.mxu0 }
 0x11d   :  { %2385 = vmatpush.bf16.msra.mxu3 %v3523_v25  ;;  %v4588_v25 = vld [vmem:[#allocation5 + $0x854] sm:$0xf] }
 0x11e   :  { %2366 = vmatpush.bf16.msrb.mxu0 %v2971_v47  ;;  %2341 = vmatmul.bf16.vlgmr.msra.gmra.mxu1 %v4901_v39  ;;  %v4027_v33 = vor.u32 %v4588_v25, %v4024_v26  ;;  %v4623_v25 = vld [vmem:[#allocation8 + $0x38] sm:$0xff] }
 0x11f   :  { %2398 = vmatpush.bf16.msrb.mxu1 %v3715_v38  ;;  %v4582_v38 = vld [vmem:[#allocation5 + $0x824] sm:$0xf]  ;;  %v2097_v11 = vpop.f32.mrf.mxu1  ;;  %v4564_v26 = vld [vmem:[#allocation5 + $0x794] sm:$0xf] }
 0x120   :  { %2379 = vmatpush.bf16.msrb.mxu2 %v3163_v49  ;;  %v4003_v47 = vor.u32 %v4582_v38, %v4000_v41  ;;  %v3595_v49 = vor.u32 %v4480_v5, %v3592_v43  ;;  %v4647_v38 = vld [vmem:[#allocation8 + $0xf8] sm:$0xff]  ;;  %v4630_v41 = vld [vmem:[#allocation8 + $0x70] sm:$0xff] }
 0x121   :  { %2386 = vmatpush.bf16.msra.mxu3 %v3499_v46  ;;  %2367 = vmatmul.bf16.vlgmr.msrb.gmra.mxu0 %v4887_v8  ;;  %v3427_v8 = vor.u32 %v4438_v19, %v3424_v20  ;;  %v3376_v46 = vld [vmem:[#allocation5 + $0x358] sm:$0xf0]  ;;  %v4123_v19 = vor.u32 %v4612_v7, %v4120_v10  ;;  %v4638_v5 = vld [vmem:[#allocation8 + $0xb0] sm:$0xff] }
 0x122   :  { %2411 = vmatpush.bf16.msra.mxu0 %v3907_v50  ;;  %v4959_v50 = vpop.f32.mrf.mxu3  ;;  %v3379_v59 = vor.u32 %v4426_v12, %v3376_v46  ;;  %v4629_v12 = vld [vmem:[#allocation8 + $0x68] sm:$0xff] }
 0x123   :  { %2399 = vmatpush.bf16.msrb.mxu1 %v3691_v54  ;;  %2380 = vmatmul.bf16.vlgmr.msrb.gmra.mxu2 %v4889_v9  ;;  %v4432_v9 = vld [vmem:[#allocation5 + $0x374] sm:$0xf]  ;;  %v3976_v54 = vld [vmem:[#allocation5 + $0x808] sm:$0xf0]  ;;  %v4637_v46 = vld [vmem:[#allocation8 + $0xa8] sm:$0xff] }
 0x124   :  { %2424 = vmatpush.bf16.msra.mxu2 %v4099_v53  ;;  %v3403_v44 = vor.u32 %v4432_v9, %v3400_v32  ;;  %v4576_v53 = vld [vmem:[#allocation5 + $0x7f4] sm:$0xf]  ;;  %v2123_v62 = vpop.f32.mrf.mxu0  ;;  %v3931_v9 = vor.u32 %v4564_v26, %v3928_v27  ;;  %v4633_v10 = vld [vmem:[#allocation8 + $0x88] sm:$0xff] }
 0x125   :  { %2387 = vmatpush.bf16.msra.mxu3 %v3475_v17  ;;  %v3352_v17 = vld [vmem:[#allocation5 + $0x328] sm:$0xf0]  ;;  %v3979_v1 = vor.u32 %v4576_v53, %v3976_v54  ;;  %v4644_v54 = vld [vmem:[#allocation8 + $0xe0] sm:$0xff] }
 0x126   :  { %2412 = vmatpush.bf16.msra.mxu0 %v3883_v63  ;;  %v4522_v63 = vld [vmem:[#allocation5 + $0x644] sm:$0xf]  ;;  %v4639_v32 = vld [vmem:[#allocation8 + $0xb8] sm:$0xff] }
 0x127   :  { %2400 = vmatpush.bf16.msrb.mxu1 %v3667_v6  ;;  %v4570_v6 = vld [vmem:[#allocation5 + $0x7c4] sm:$0xf]  ;;  %v4643_v62 = vld [vmem:[#allocation8 + $0xd8] sm:$0xff] }
 0x128   :  { %2425 = vmatpush.bf16.msra.mxu2 %v4075_v4  ;;  %v4961_v4 = vpop.f32.mrf.mxu2  ;;  %v3955_v20 = vor.u32 %v4570_v6, %v3952_v13  ;;  %v4625_v6 = vld [vmem:[#allocation8 + $0x48] sm:$0xff] }
 0x129   :  { %2388 = vmatpush.bf16.msra.mxu3 %v3451_v16  ;;  %v3355_v16 = vor.u32 %v4420_v60, %v3352_v17  ;;  %v4618_v60 = vld [vmem:[#allocation8 + $0x10] sm:$0xff] }
 0x12a   :  { %2413 = vmatpush.bf16.msra.mxu0 %v3859_v18  ;;  %v3763_v18 = vor.u32 %v4522_v63, %v3760_v0  ;;  %v2110_v24 = vpop.f32.mrf.mxu3  ;;  %v4634_v0 = vld [vmem:[#allocation8 + $0x90] sm:$0xff] }
 0x12b   :  { %2401 = vmatpush.bf16.msrb.mxu1 %v3643_v22  ;;  %v4516_v22 = vld [vmem:[#allocation5 + $0x614] sm:$0xf] }
 0x12c   :  { %2426 = vmatpush.bf16.msra.mxu2 %v4051_v21  ;;  %v3547_v21 = vor.u32 %v4468_v14, %v3544_v15  ;;  %v4616_v14 = vld [vmem:[#allocation8] sm:$0xff]  ;;  %v2450_v15 = vmax.f32 %v4933_v42, 0.0 }
 0x12d   :  { %2389 = vmatpush.bf16.msra.mxu3 %v3427_v8  ;;  %v3739_v8 = vor.u32 %v4516_v22, %v3736_v23 }
 0x12e   :  { %2414 = vmatpush.bf16.msra.mxu0 %v3835_v29  ;;  %v4963_v29 = vpop.f32.mrf.mxu0 }
 0x12f   :  { %2402 = vmatpush.bf16.msrb.mxu1 %v3619_v35  ;;  %v4965_v35 = vld [vmem:[#allocation7] sm:$0x3f] }
 0x130   :  { %2427 = vmatpush.bf16.msra.mxu2 %v4027_v33  ;;  %v2136_v33 = vpop.f32.mrf.mxu2  ;;  %v396_v36 = vperm.slane %v4965_v35, 2  ;;  %v397_v24 = vperm.slane %v4965_v35, 3 }
 0x131   :  { %2390 = vmatpush.bf16.msra.mxu3 %v3403_v44  ;;  %v4621_v44 = vld [vmem:[#allocation8 + $0x28] sm:$0xff] }
 0x132   :  { %2415 = vmatpush.bf16.msra.mxu0 %v3811_v45  ;;  %v2096_v43 = vadd.f32 %v4957_v40, %v396_v36  ;;  %v4646_v45 = vld [vmem:[#allocation8 + $0xf0] sm:$0xff]  ;;  %v4645_v40 = vld [vmem:[#allocation8 + $0xe8] sm:$0xff] }
 0x133   :  { %2403 = vmatpush.bf16.msrb.mxu1 %v3595_v49  ;;  %v4620_v49 = vld [vmem:[#allocation8 + $0x20] sm:$0xff] }
 0x134   :  { %2428 = vmatpush.bf16.msra.mxu2 %v4003_v47 }
 0x135   :  { %2391 = vmatpush.bf16.msra.mxu3 %v3379_v59 }
 0x136   :  { %2416 = vmatpush.bf16.msra.mxu0 %v3787_v61 }
 0x137   :  { %2404 = vmatpush.bf16.msrb.mxu1 %v3571_v2  ;;  %v2147_v47 = vpop.f32.mrf.mxu1  ;;  %v4617_v2 = vld [vmem:[#allocation8 + $0x8] sm:$0xff] }
 0x138   :  { %2429 = vmatpush.bf16.msra.mxu2 %v3979_v1 }
 0x139   :  { %2392 = vmatpush.bf16.msra.mxu3 %v3355_v16  ;;  %v4624_v16 = vld [vmem:[#allocation8 + $0x40] sm:$0xff] }
 0x13a   :  { %2417 = vmatpush.bf16.msra.mxu0 %v3763_v18  ;;  %v4641_v18 = vld [vmem:[#allocation8 + $0xc8] sm:$0xff] }
 0x13b   :  { %2405 = vmatpush.bf16.msrb.mxu1 %v3547_v21  ;;  %v4632_v21 = vld [vmem:[#allocation8 + $0x80] sm:$0xff] }
 0x13c   :  { %2430 = vmatpush.bf16.msra.mxu2 %v3955_v20  ;;  %2393 = vmatmul.bf16.vlgmr.msra.gmra.mxu3 %v4883_v55  ;;  %v2175_v55 = vpop.f32.mrf.mxu0 }
 0x13d   :  { %2444 = vmatpush.bf16.msrb.mxu3 %v4123_v19 }
 0x13e   :  { %2418 = vmatpush.bf16.msra.mxu0 %v3739_v8  ;;  %2406 = vmatmul.bf16.vlgmr.msrb.gmra.mxu1 %v4885_v57  ;;  %v2109_v57 = vadd.f32 %v4959_v50, %v2096_v43  ;;  %v4635_v50 = vld [vmem:[#allocation8 + $0x98] sm:$0xff] }
 0x13f   :  { %2850 = vmatpush.bf16.msra.mxu1 %v4623_v25  ;;  %v2160_v58 = vpop.f32.mrf.mxu3  ;;  %v2149_v61 = vpop.f32.mrf.mxu1 }
 0x140   :  { %2431 = vmatpush.bf16.msra.mxu2 %v3931_v9  ;;  %v2122_v53 = vadd.f32 %v4955_v31, %v2109_v57  ;;  %v4626_v31 = vld [vmem:[#allocation8 + $0x50] sm:$0xff] }
 0x141   :  { %2863 = vmatpush.bf16.msra.mxu3 %v4631_v28  ;;  %2419 = vmatmul.bf16.vlgmr.msra.gmra.mxu0 %v4899_v34  ;;  %v4619_v34 = vld [vmem:[#allocation8 + $0x18] sm:$0xff]  ;;  %v4662_v61 = vld [vmem:[#allocation8 + $0x170] sm:$0xff] }
 0x142   :  { %2876 = vmatpush.bf16.msrb.mxu0 %v4639_v32  ;;  %v2135_v59 = vadd.f32 %v4961_v4, %v2122_v53  ;;  %v2186_v63 = vpop.f32.mrf.mxu2  ;;  %v4642_v4 = vld [vmem:[#allocation8 + $0xd0] sm:$0xff] }
 0x143   :  { %2851 = vmatpush.bf16.msra.mxu1 %v4622_v37  ;;  %2432 = vmatmul.bf16.vlgmr.msra.gmra.mxu2 %v4901_v39  ;;  %v4627_v39 = vld [vmem:[#allocation8 + $0x58] sm:$0xff]  ;;  %v2187_v25 = vadd.f32 %v2186_v63, %v397_v24 }
 0x144   :  { %2889 = vmatpush.bf16.msrb.mxu2 %v4647_v38  ;;  %v2199_v56 = vpop.f32.mrf.mxu0  ;;  %v2148_v17 = vadd.f32 %v2147_v47, %v2135_v59  ;;  %v4652_v47 = vld [vmem:[#allocation8 + $0x120] sm:$0xff]  ;;  %v4663_v59 = vld [vmem:[#allocation8 + $0x178] sm:$0xff] }
 0x145   :  { %2864 = vmatpush.bf16.msra.mxu3 %v4630_v41  ;;  %v2200_v27 = vadd.f32 %v2199_v56, %v2187_v25  ;;  %v4648_v56 = vld [vmem:[#allocation8 + $0x100] sm:$0xff]  ;;  %v399_v25 = vperm.slane %v4965_v35, 5 }
 0x146   :  { %2877 = vmatpush.bf16.msrb.mxu0 %v4638_v5  ;;  %v2161_v1 = vadd.f32 %v2160_v58, %v2148_v17  ;;  %v4654_v5 = vld [vmem:[#allocation8 + $0x130] sm:$0xff] }
 0x147   :  { %2852 = vmatpush.bf16.msra.mxu1 %v4621_v44  ;;  %v2162_v11 = vpop.f32.mrf.mxu3 }
 0x148   :  { %2890 = vmatpush.bf16.msrb.mxu2 %v4646_v45  ;;  %v2174_v13 = vadd.f32 %v4963_v29, %v2161_v1  ;;  %v4655_v29 = vld [vmem:[#allocation8 + $0x138] sm:$0xff] }
 0x149   :  { %2865 = vmatpush.bf16.msra.mxu3 %v4629_v12  ;;  %v4653_v12 = vld [vmem:[#allocation8 + $0x128] sm:$0xff] }
 0x14a   :  { %2878 = vmatpush.bf16.msrb.mxu0 %v4637_v46  ;;  %v2188_v20 = vpop.f32.mrf.mxu2  ;;  %v2452_v22 = vmax.f32 %v2174_v13, 0.0 }
 0x14b   :  { %2853 = vmatpush.bf16.msra.mxu1 %v4620_v49 }
 0x14c   :  { %2891 = vmatpush.bf16.msrb.mxu2 %v4645_v40  ;;  %4129 = vmatmul.msk.bf16.vlgmr.msrb.gmra.mxu3 %vm1900_vm0, %v4895_v48  ;;  %v2083_v48 = vadd.f32 %v4949_v30, %v4945_v3  ;;  %v2201_v7 = vpop.f32.mrf.mxu0  ;;  %v2456_v3 = vpack.c.bf16 %v2450_v15, %v2450_v15  ;;  %v4640_v30 = vld [vmem:[#allocation8 + $0xc0] sm:$0xff]  ;;  %v2458_v42 = vpack.c.bf16 %v2452_v22, %v2452_v22  ;;  %v4651_v40 = vld [vmem:[#allocation8 + $0x118] sm:$0xff] }
 0x14d   :  { %2866 = vmatpush.bf16.msra.mxu3 %v4628_v51  ;;  %v4650_v51 = vld [vmem:[#allocation8 + $0x110] sm:$0xff]  ;;  %v4659_v15 = vld [vmem:[#allocation8 + $0x158] sm:$0xff] }
 0x14e   :  { %2879 = vmatpush.bf16.msrb.mxu0 %v4636_v52  ;;  %v2451_v19 = vmax.f32 %v2083_v48, 0.0 }
 0x14f   :  { %2854 = vmatpush.bf16.msra.mxu1 %v4619_v34  ;;  %v4649_v34 = vld [vmem:[#allocation8 + $0x108] sm:$0xff] }
 0x150   :  { %2892 = vmatpush.bf16.msrb.mxu2 %v4644_v54  ;;  %v2457_v23 = vpack.c.bf16 %v2451_v19, %v2451_v19 }
 0x151   :  { %2867 = vmatpush.bf16.msra.mxu3 %v4627_v39 }
 0x152   :  { %2880 = vmatpush.bf16.msrb.mxu0 %v4635_v50 }
 0x153   :  { %2855 = vmatpush.bf16.msra.mxu1 %v4618_v60 }
 0x154   :  { %2893 = vmatpush.bf16.msrb.mxu2 %v4643_v62  ;;  %v398_v62 = vperm.slane %v4965_v35, 4 }
 0x155   :  { %2868 = vmatpush.bf16.msra.mxu3 %v4626_v31 }
 0x156   :  { %2881 = vmatpush.bf16.msrb.mxu0 %v4634_v0 }
 0x157   :  { %2856 = vmatpush.bf16.msra.mxu1 %v4617_v2  ;;  %v2212_v26 = vpop.f32.mrf.mxu1  ;;  %v4661_v2 = vld [vmem:[#allocation8 + $0x168] sm:$0xff] }
 0x158   :  { %2894 = vmatpush.bf16.msrb.mxu2 %v4642_v4  ;;  %v2213_v28 = vadd.f32 %v2212_v26, %v2200_v27 }
 0x159   :  { %2869 = vmatpush.bf16.msra.mxu3 %v4625_v6 }
 0x15a   :  { %2882 = vmatpush.bf16.msrb.mxu0 %v4633_v10  ;;  %v4660_v10 = vld [vmem:[#allocation8 + $0x160] sm:$0xff] }
 0x15b   :  { %2857 = vmatpush.bf16.msra.mxu1 %v4616_v14 }
 0x15c   :  { %2895 = vmatpush.bf16.msrb.mxu2 %v4641_v18  ;;  %v4658_v18 = vld [vmem:[#allocation8 + $0x150] sm:$0xff] }
 0x15d   :  { %2870 = vmatpush.bf16.msra.mxu3 %v4624_v16 }
 0x15e   :  { %2858 = vmatmul.bf16.vlgmr.msra.gmra.mxu1 %v2456_v3  ;;  %2883 = vmatpush.bf16.msrb.mxu0 %v4632_v21  ;;  %v2251_v8 = vpop.f32.mrf.mxu0 }
 0x15f   :  { %v2214_v9 = vpop.f32.mrf.mxu1  ;;  %v2225_v32 = vpop.f32.mrf.mxu3  ;;  %2902 = vmatpush.bf16.msrb.mxu1 %v4655_v29 }
 0x160   :  { %2871 = vmatmul.bf16.vlgmr.msra.gmra.mxu3 %v2457_v23  ;;  %2896 = vmatpush.bf16.msrb.mxu2 %v4640_v30  ;;  %v2226_v33 = vadd.f32 %v2225_v32, %v2213_v28  ;;  %v4657_v23 = vld [vmem:[#allocation8 + $0x148] sm:$0xff] }
 0x161   :  { %2884 = vmatmul.bf16.vlgmr.msrb.gmra.mxu0 %v2458_v42  ;;  %2915 = vmatpush.bf16.msrb.mxu3 %v4663_v59  ;;  %v4656_v42 = vld [vmem:[#allocation8 + $0x140] sm:$0xff] }
 0x162   :  { %v2238_v36 = vpop.f32.mrf.mxu2 }
 0x163   :  { %v2239_v37 = vadd.f32 %v2238_v36, %v2226_v33  ;;  %2903 = vmatpush.bf16.msrb.mxu1 %v4654_v5 }
 0x165   :  { %v2252_v38 = vadd.f32 %v2251_v8, %v2239_v37  ;;  %2916 = vmatpush.bf16.msrb.mxu3 %v4662_v61 }
 0x166   :  { %v2253_v41 = vpop.f32.mrf.mxu0 }
 0x167   :  { %v2264_v43 = vpop.f32.mrf.mxu1  ;;  %v2227_v44 = vpop.f32.mrf.mxu3  ;;  %2904 = vmatpush.bf16.msrb.mxu1 %v4653_v12 }
 0x168   :  { %v2265_v45 = vadd.f32 %v2264_v43, %v2252_v38 }
 0x169   :  { %2917 = vmatpush.bf16.msrb.mxu3 %v4661_v2 }
 0x16a   :  { %v2240_v55 = vpop.f32.mrf.mxu2  ;;  %v2453_v46 = vmax.f32 %v2265_v45, 0.0 }
 0x16b   :  { %2905 = vmatpush.bf16.msrb.mxu1 %v4652_v47 }
 0x16c   :  { %v2459_v57 = vpack.c.bf16 %v2453_v46, %v2453_v46 }
 0x16d   :  { %2918 = vmatpush.bf16.msrb.mxu3 %v4660_v10 }
 0x16e   :  { %2897 = vmatmul.bf16.vlgmr.msrb.gmra.mxu2 %v2459_v57  ;;  %v4674_v57 = vld [vmem:[#allocation10] ss:$0 sm:$0xff] }
 0x16f   :  { %v2266_v49 = vpop.f32.mrf.mxu1  ;;  %2906 = vmatpush.bf16.msrb.mxu1 %v4651_v40 }
 0x171   :  { %2919 = vmatpush.bf16.msrb.mxu3 %v4659_v15 }
 0x173   :  { %2907 = vmatpush.bf16.msrb.mxu1 %v4650_v51 }
 0x175   :  { %2920 = vmatpush.bf16.msrb.mxu3 %v4658_v18 }
 0x177   :  { %2908 = vmatpush.bf16.msrb.mxu1 %v4649_v34 }
 0x179   :  { %2921 = vmatpush.bf16.msrb.mxu3 %v4657_v23 }
 0x17b   :  { %v2290_v52 = vpop.f32.mrf.mxu1  ;;  %2909 = vmatpush.bf16.msrb.mxu1 %v4648_v56 }
 0x17d   :  { %2922 = vmatpush.bf16.msrb.mxu3 %v4656_v42 }
 0x17e   :  { %v2316_v53 = vpop.f32.mrf.mxu0 }
 0x17f   :  { %v2277_v39 = vpop.f32.mrf.mxu3 }
 0x180   :  { %v2278_v17 = vadd.f32 %v2277_v39, %v398_v62 }
 0x182   :  { %v2303_v54 = vpop.f32.mrf.mxu2  ;;  %v2291_v0 = vadd.f32 %v2290_v52, %v2278_v17 }
 0x183   :  { %v2292_v58 = vpop.f32.mrf.mxu1 }
 0x184   :  { %v2304_v1 = vadd.f32 %v2303_v54, %v2291_v0 }
 0x186   :  { %v2318_v50 = vpop.f32.mrf.mxu0  ;;  %v2317_v4 = vadd.f32 %v2316_v53, %v2304_v1 }
 0x187   :  { %v2279_v60 = vpop.f32.mrf.mxu3 }
 0x18a   :  { %v2305_v31 = vpop.f32.mrf.mxu2 }
 0x192   :  { %v2355_v63 = vpop.f32.mrf.mxu2 }
 0x19a   :  { %v2357_v6 = vpop.f32.mrf.mxu2 }
 0x19b   :  { %v2342_v48 = vpop.f32.mrf.mxu1 }
 0x19e   :  { %v2368_v7 = vpop.f32.mrf.mxu0 }
 0x19f   :  { %v2329_v11 = vpop.f32.mrf.mxu3  ;;  %v2369_v26 = vadd.f32 %v2368_v7, %v399_v25 }
 0x1a0   :  { %v2330_v13 = vadd.f32 %v2329_v11, %v2317_v4 }
 0x1a2   :  { %v2343_v14 = vadd.f32 %v2342_v48, %v2330_v13 }
 0x1a3   :  { %v2344_v21 = vpop.f32.mrf.mxu1 }
 0x1a4   :  { %v2356_v16 = vadd.f32 %v2355_v63, %v2343_v14 }
 0x1a6   :  { %v2381_v19 = vpop.f32.mrf.mxu2  ;;  %v2454_v20 = vmax.f32 %v2356_v16, 0.0  ;;  %v2370_v22 = vpop.f32.mrf.mxu0 }
 0x1a7   :  { %v2331_v3 = vpop.f32.mrf.mxu3  ;;  %v2382_v28 = vadd.f32 %v2381_v19, %v2369_v26 }
 0x1a8   :  { %v2460_v30 = vpack.c.bf16 %v2454_v20, %v2454_v20 }
 0x1aa   :  { %2910 = vmatmul.bf16.vlgmr.msrb.gmra.mxu1 %v2460_v30 }
 0x1ae   :  { %v2383_v24 = vpop.f32.mrf.mxu2 }
 0x1bb   :  { %v2407_v27 = vpop.f32.mrf.mxu1 }
 0x1be   :  { %v2420_v8 = vpop.f32.mrf.mxu0 }
 0x1bf   :  { %v2394_v29 = vpop.f32.mrf.mxu3 }
 0x1c0   :  { %v2395_v9 = vadd.f32 %v2394_v29, %v2382_v28 }
 0x1c2   :  { %v2408_v36 = vadd.f32 %v2407_v27, %v2395_v9 }
 0x1c3   :  { %v2409_v32 = vpop.f32.mrf.mxu1 }
 0x1c4   :  { %v2421_v41 = vadd.f32 %v2420_v8, %v2408_v36 }
 0x1c6   :  { %v2433_v33 = vpop.f32.mrf.mxu2  ;;  %v2422_v37 = vpop.f32.mrf.mxu0 }
 0x1c7   :  { %v2396_v38 = vpop.f32.mrf.mxu3  ;;  %v2434_v43 = vadd.f32 %v2433_v33, %v2421_v41 }
 0x1ce   :  { %v2435_v5 = vpop.f32.mrf.mxu2 }
 0x1cf   :  { %v2446_v44 = vpop.f32.mrf.mxu3 }
 0x1d0   :  { %v2447_v45 = vadd.f32 %v2446_v44, %v2434_v43 }
 0x1d2   :  { %v2455_v12 = vmax.f32 %v2447_v45, 0.0 }
 0x1d4   :  { %v2461_v55 = vpack.c.bf16 %v2455_v12, %v2455_v12 }
 0x1d6   :  { %2923 = vmatmul.bf16.vlgmr.msrb.gmra.mxu3 %v2461_v55 }
 0x1d7   :  { %v2448_v35 = vpop.f32.mrf.mxu3 }
 0x1db   :  { %v2859_v46 = vpop.f32.mrf.mxu1 }
 0x1dc   :  { %v2860_v49 = vadd.f32 %v4674_v57, %v2859_v46 }
 0x1de   :  { %v2885_v47 = vpop.f32.mrf.mxu0 }
 0x1e3   :  { %v2872_v40 = vpop.f32.mrf.mxu3  ;;  %v2861_v52 = vpop.f32.mrf.mxu1 }
 0x1e4   :  { %v2873_v51 = vadd.f32 %v2872_v40, %v2860_v49 }
 0x1e6   :  { %v2886_v53 = vadd.f32 %v2885_v47, %v2873_v51  ;;  %v2887_v34 = vpop.f32.mrf.mxu0 }
 0x1eb   :  { %v2874_v39 = vpop.f32.mrf.mxu3 }
 0x1f1   :  { %v2898_v54 = vpop.f32.mrf.mxu2 }
 0x1f2   :  { %v2899_v56 = vadd.f32 %v2898_v54, %v2886_v53 }
 0x1f9   :  { %v2900_v58 = vpop.f32.mrf.mxu2 }
 0x227   :  { %v2911_v50 = vpop.f32.mrf.mxu1 }
 0x228   :  { %v2912_v60 = vadd.f32 %v2911_v50, %v2899_v56 }
 0x22f   :  { %v2913_v59 = vpop.f32.mrf.mxu1 }
 0x259   :  { %v2924_v61 = vpop.f32.mrf.mxu3 }
 0x25a   :  { %v2925_v31 = vadd.f32 %v2924_v61, %v2912_v60 }
 0x25c   :  { %2928 = vst [vmem:[#allocation11] sm:$0xff] %v2925_v31 }
 0x25d   :  { %2939 = dma.vmem_to_hbm [thread:$0]  %s2935_s4, 128, %s2937_s21, [#allocation4]  }
 0x261   :  { %v2926_v62 = vpop.f32.mrf.mxu3 }
 0x262   :  { %4826 = dma.done.wait [#allocation4], 128  }
 0x263   :  { %4827 = vsyncadd [#allocation4], 4294967168 }
 0x264   :  { %2944 = vsyncpa [#allocation3], 1 }
 0x265   :  { %2945 = vsyncpa [#allocation6], 1 }
 0x266   :  { %2946 = vsyncpa [#allocation9], 1 }
 0x267   :  { %2947 = vsyncpa [#allocation4], 1 }

</bundles_post_ra>
